<compile_context>
chip_gen: v7x
topology: tpu7x:2x2x1
jax: 0.10.0
libtpu: 0.0.40
codegen_flags: <defaults>
</compile_context>

<pallas_src>
import jax
import jax.numpy as jnp
from jax.experimental import pallas as pl
from jax.experimental.pallas import tpu as pltpu


def residual_block_kernel(x_ref, w1_ref, b1_ref, w2_ref, b2_ref, o_ref):
    # x_ref : (Nb, H, WC)  lane-dense activations ((w,c) on lanes), f32
    # w*_ref: (3, WC, WC)  per-kh banded im2col weights, eval-BN scale folded
    # b*_ref: (1, WC)      folded conv bias + BN bias, f32
    # o_ref : (Nb, H, WC)
    Nb, H, WC = o_ref.shape
    M = Nb * H
    cdt = w1_ref.dtype                      # matmul operand dtype (bf16 / f32)

    x = x_ref[...]                          # (Nb, H, WC) f32
    zrow = jnp.zeros((Nb, 1, WC), jnp.float32)

    def conv_bn(src, w_ref, b_ref):
        # 3x3 conv (+ folded eval-BN) as three accumulating K=WC MXU dots, one
        # per kh row tap.  kw shifts / W-edge zeroing live in the banded
        # weights; the kh halo is an in-register zero row built per image so
        # it never leaks across batch entries.  Epilogue math stays f32.
        up = jnp.concatenate([zrow, src[:, :H - 1]], axis=1)   # x[h-1]
        dn = jnp.concatenate([src[:, 1:], zrow], axis=1)       # x[h+1]
        acc = jnp.dot(up.reshape(M, WC).astype(cdt), w_ref[0],
                      preferred_element_type=jnp.float32)
        acc = acc + jnp.dot(src.reshape(M, WC).astype(cdt), w_ref[1],
                            preferred_element_type=jnp.float32)
        acc = acc + jnp.dot(dn.reshape(M, WC).astype(cdt), w_ref[2],
                            preferred_element_type=jnp.float32)
        return acc + b_ref[...]                                # (M, WC) f32

    h1 = jnp.maximum(conv_bn(x, w1_ref, b1_ref), 0.0)          # conv1+BN1+ReLU
    y = conv_bn(h1.reshape(Nb, H, WC), w2_ref, b2_ref)         # conv2+BN2
    # residual add + ReLU, lane-dense unmasked full-width store
    o_ref[...] = jnp.maximum(y.reshape(Nb, H, WC) + x, 0.0).astype(o_ref.dtype)


def _banded_weight(w_oihw, scale, W, dtype):
    """torch conv weight (Cout,Cin,3,3) -> (3, W*C, W*C) per-kh banded im2col
    matrices, eval-BN scale folded into the Cout columns.  kw shifts and the
    SAME-padding W-edge zeroing are encoded in the band structure."""
    C = w_oihw.shape[0]
    wt = jnp.transpose(w_oihw, (2, 3, 1, 0)) * scale[None, None, None, :]  # (kh,kw,ci,co)
    # S[kw, wi, ww] = 1  iff  wi == ww + kw - 1
    S = jnp.stack([jnp.eye(W, W, k=1 - kw, dtype=wt.dtype) for kw in range(3)])
    big = jnp.einsum("kxw,hkio->hxiwo", S, wt)          # (kh, wi, ci, ww, co)
    return big.reshape(3, W * C, W * C).astype(dtype)


def _pick_nb(N, H, target_m=256):
    """Largest batch-tile Nb dividing N with Nb*H <= target_m (MXU M target)
    while keeping >= 2 grid steps so both v7x TensorCores get work."""
    cands = [d for d in range(1, N + 1)
             if N % d == 0 and d * H <= target_m and N // d >= 2]
    return max(cands) if cands else 1


def _build_call(N, H, WC, Nb, out_dtype, single_buffer_consts):
    # Grid-invariant operands (weights / biases): constant index_map; request
    # single buffering to halve their VMEM footprint.
    const_kw = dict(pipeline_mode=pl.Buffered(1)) if single_buffer_consts else {}
    grid_spec = pltpu.PrefetchScalarGridSpec(
        num_scalar_prefetch=0,
        grid=(N // Nb,),
        in_specs=[
            pl.BlockSpec((Nb, H, WC), lambda b: (b, 0, 0)),
            pl.BlockSpec((3, WC, WC), lambda b: (0, 0, 0), **const_kw),
            pl.BlockSpec((1, WC), lambda b: (0, 0), **const_kw),
            pl.BlockSpec((3, WC, WC), lambda b: (0, 0, 0), **const_kw),
            pl.BlockSpec((1, WC), lambda b: (0, 0), **const_kw),
        ],
        out_specs=pl.BlockSpec((Nb, H, WC), lambda b: (b, 0, 0)),
    )
    return pl.pallas_call(
        residual_block_kernel,
        out_shape=jax.ShapeDtypeStruct((N, H, WC), out_dtype),
        grid_spec=grid_spec,
        compiler_params=pltpu.CompilerParams(
            dimension_semantics=("parallel",)),
    )


def residual_block(x_nchw, params, eps=1e-5, matmul_dtype=jnp.bfloat16,
                   target_m=256):
    """Forward pass of ResidualBlock (eval-mode BN).  x_nchw: (N, C, H, W) f32.

    matmul_dtype=bfloat16 (default) feeds the MXU natively and halves weight
    DMA; all elementwise epilogue math stays f32.  Use jnp.float32 for
    bit-level parity with the f32 reference.
    """
    # TODO(synk): training-mode BatchNorm (batch statistics + running-stat
    # update with momentum=0.01) is not implemented; this is the eval forward.
    (w1, cb1, g1, be1, m1, v1,
     w2, cb2, g2, be2, m2, v2) = params

    N, C, H, W = x_nchw.shape
    WC = W * C
    Nb = _pick_nb(N, H, target_m)

    # NCHW -> lane-dense (N, H, W*C); in a full model this happens once at
    # model entry/exit, not per block.
    x_lane = jnp.transpose(x_nchw, (0, 2, 3, 1)).reshape(N, H, WC)

    # Fold conv bias + eval BN:  BN(conv(x)+cb) = conv_nobias(x)*s + ((cb-m)*s + be)
    s1 = g1 / jnp.sqrt(v1 + eps)
    s2 = g2 / jnp.sqrt(v2 + eps)
    b1 = jnp.tile((cb1 - m1) * s1 + be1, W).reshape(1, WC).astype(jnp.float32)
    b2 = jnp.tile((cb2 - m2) * s2 + be2, W).reshape(1, WC).astype(jnp.float32)
    w1b = _banded_weight(w1, s1, W, matmul_dtype)
    w2b = _banded_weight(w2, s2, W, matmul_dtype)

    args = (x_lane, w1b, b1, w2b, b2)
    try:
        out_lane = _build_call(N, H, WC, Nb, x_nchw.dtype, True)(*args)
    except Exception:
        # pipeline_mode=pl.Buffered(1) unsupported on this jax build; fall back
        # to default double-buffered constants (correctness identical).
        out_lane = _build_call(N, H, WC, Nb, x_nchw.dtype, False)(*args)

    return jnp.transpose(out_lane.reshape(N, H, W, C), (0, 3, 1, 2))  # -> NCHW


def _reference(x_nchw, params, eps=1e-5):
    """Pure-JAX reference (eval-mode BN) for correctness checking."""
    (w1, cb1, g1, be1, m1, v1,
     w2, cb2, g2, be2, m2, v2) = params

    def conv(x, w, b):
        y = jax.lax.conv_general_dilated(
            x, w, window_strides=(1, 1), padding="SAME",
            dimension_numbers=("NCHW", "OIHW", "NCHW"))
        return y + b[None, :, None, None]

    def bn(x, g, be, m, v):
        return (x - m[None, :, None, None]) / jnp.sqrt(v[None, :, None, None] + eps) \
               * g[None, :, None, None] + be[None, :, None, None]

    out = jax.nn.relu(bn(conv(x_nchw, w1, cb1), g1, be1, m1, v1))
    out = bn(conv(out, w2, cb2), g2, be2, m2, v2)
    return jax.nn.relu(out + x_nchw)


if __name__ == "__main__":
    # W*C = 128 -> lane-dense; Nb=8 picked automatically -> matmul M = 128,
    # grid = (2,) ("parallel"), one step per v7x TensorCore at this demo size.
    N, C, H, W = 16, 8, 16, 16
    key = jax.random.PRNGKey(0)
    ks = jax.random.split(key, 11)

    x = jax.random.normal(ks[0], (N, C, H, W), jnp.float32)

    # Deterministic synthetic parameters (shapes from nn.Conv2d / nn.BatchNorm2d)
    w1 = jax.random.normal(ks[1], (C, C, 3, 3), jnp.float32) * 0.1
    cb1 = jax.random.normal(ks[2], (C,), jnp.float32) * 0.1
    g1 = 1.0 + 0.1 * jax.random.normal(ks[3], (C,), jnp.float32)
    be1 = 0.1 * jax.random.normal(ks[4], (C,), jnp.float32)
    m1 = 0.1 * jax.random.normal(ks[5], (C,), jnp.float32)
    v1 = jax.random.uniform(ks[6], (C,), jnp.float32, 0.5, 1.5)

    w2 = jax.random.normal(ks[7], (C, C, 3, 3), jnp.float32) * 0.1
    cb2 = jax.random.normal(ks[8], (C,), jnp.float32) * 0.1
    g2 = 1.0 + 0.1 * jax.random.normal(ks[9], (C,), jnp.float32)
    be2 = 0.1 * jax.random.normal(ks[10], (C,), jnp.float32)
    m2 = jnp.zeros((C,), jnp.float32)
    v2 = jnp.ones((C,), jnp.float32)

    params = (w1, cb1, g1, be1, m1, v1, w2, cb2, g2, be2, m2, v2)

    ref = jax.block_until_ready(_reference(x, params))

    # f32 matmul path: bit-level parity with the f32 reference.
    out_f32 = jax.block_until_ready(
        residual_block(x, params, matmul_dtype=jnp.float32))
    assert out_f32.shape == (N, C, H, W)
    assert jnp.max(jnp.abs(out_f32 - ref)) < 1e-4, "f32 mismatch vs reference"

    # bf16 matmul path (perf default on v5e/v6e/v7x): relaxed tolerance.
    out_bf16 = jax.block_until_ready(residual_block(x, params))
    assert out_bf16.shape == (N, C, H, W)
    assert jnp.max(jnp.abs(out_bf16 - ref)) < 5e-2, "bf16 mismatch vs reference"

    print("KERNEL_OK")
</pallas_src>

<mosaic_0001>
module attributes {stable_mosaic.version = 11 : i64} {
  func.func @residual_block_kernel(%arg0: i32, %arg1: memref<8x16x128xf32, #tpu.memory_space<vmem>>, %arg2: memref<3x128x128xf32, #tpu.memory_space<vmem>>, %arg3: memref<1x128xf32, #tpu.memory_space<vmem>>, %arg4: memref<3x128x128xf32, #tpu.memory_space<vmem>>, %arg5: memref<1x128xf32, #tpu.memory_space<vmem>>, %arg6: memref<8x16x128xf32, #tpu.memory_space<vmem>>) attributes {dimension_semantics = [#tpu.dimension_semantics<parallel>], iteration_bounds = array<i64: 2>, scalar_prefetch = 0 : i64, scratch_operands = 0 : i64, tpu.core_type = #tpu.core_type<tc>, window_params = [{transform_indices = @transform_0, window_bounds = array<i64: 8, 16, 128>}, {pipeline_mode = #tpu.pipeline_mode<synchronous>, transform_indices = @transform_1, window_bounds = array<i64: 3, 128, 128>}, {pipeline_mode = #tpu.pipeline_mode<synchronous>, transform_indices = @transform_2, window_bounds = array<i64: 1, 128>}, {pipeline_mode = #tpu.pipeline_mode<synchronous>, transform_indices = @transform_3, window_bounds = array<i64: 3, 128, 128>}, {pipeline_mode = #tpu.pipeline_mode<synchronous>, transform_indices = @transform_4, window_bounds = array<i64: 1, 128>}, {transform_indices = @transform_5, window_bounds = array<i64: 8, 16, 128>}]} {
    %c0 = arith.constant 0 : index
    %c0_0 = arith.constant 0 : index
    %c0_1 = arith.constant 0 : index
    %0 = vector.load %arg1[%c0, %c0_0, %c0_1] : memref<8x16x128xf32, #tpu.memory_space<vmem>>, vector<8x16x128xf32>
    %cst = arith.constant 0.000000e+00 : f32
    %1 = vector.broadcast %cst : f32 to vector<8x1x128xf32>
    %2 = vector.extract_strided_slice %0 {offsets = [0, 0, 0], sizes = [8, 15, 128], strides = [1, 1, 1]} : vector<8x16x128xf32> to vector<8x15x128xf32>
    %3 = tpu.concatenate %1, %2 in 1 : vector<8x1x128xf32>, vector<8x15x128xf32> -> vector<8x16x128xf32>
    %4 = vector.extract_strided_slice %0 {offsets = [0, 1, 0], sizes = [8, 15, 128], strides = [1, 1, 1]} : vector<8x16x128xf32> to vector<8x15x128xf32>
    %5 = tpu.concatenate %4, %1 in 1 : vector<8x15x128xf32>, vector<8x1x128xf32> -> vector<8x16x128xf32>
    %6 = vector.shape_cast %3 : vector<8x16x128xf32> to vector<128x128xf32>
    %c0_2 = arith.constant 0 : index
    %c0_3 = arith.constant 0 : index
    %c0_4 = arith.constant 0 : index
    %7 = vector.load %arg2[%c0_2, %c0_3, %c0_4] : memref<3x128x128xf32, #tpu.memory_space<vmem>>, vector<1x128x128xf32>
    %8 = vector.shape_cast %7 : vector<1x128x128xf32> to vector<128x128xf32>
    %cst_5 = arith.constant dense<0.000000e+00> : vector<128x128xf32>
    %9 = tpu.matmul %6, %8, %cst_5 {dimension_numbers = #tpu.dot_dimension_numbers<[1], [0], [0], [1], [0, 0, 1, 1], [], []>} : vector<128x128xf32>, vector<128x128xf32>, vector<128x128xf32> -> vector<128x128xf32>
    %10 = vector.shape_cast %0 : vector<8x16x128xf32> to vector<128x128xf32>
    %c1 = arith.constant 1 : index
    %c0_6 = arith.constant 0 : index
    %c0_7 = arith.constant 0 : index
    %11 = vector.load %arg2[%c1, %c0_6, %c0_7] : memref<3x128x128xf32, #tpu.memory_space<vmem>>, vector<1x128x128xf32>
    %12 = vector.shape_cast %11 : vector<1x128x128xf32> to vector<128x128xf32>
    %cst_8 = arith.constant dense<0.000000e+00> : vector<128x128xf32>
    %13 = tpu.matmul %10, %12, %cst_8 {dimension_numbers = #tpu.dot_dimension_numbers<[1], [0], [0], [1], [0, 0, 1, 1], [], []>} : vector<128x128xf32>, vector<128x128xf32>, vector<128x128xf32> -> vector<128x128xf32>
    %14 = arith.addf %9, %13 : vector<128x128xf32>
    %15 = vector.shape_cast %5 : vector<8x16x128xf32> to vector<128x128xf32>
    %c2 = arith.constant 2 : index
    %c0_9 = arith.constant 0 : index
    %c0_10 = arith.constant 0 : index
    %16 = vector.load %arg2[%c2, %c0_9, %c0_10] : memref<3x128x128xf32, #tpu.memory_space<vmem>>, vector<1x128x128xf32>
    %17 = vector.shape_cast %16 : vector<1x128x128xf32> to vector<128x128xf32>
    %cst_11 = arith.constant dense<0.000000e+00> : vector<128x128xf32>
    %18 = tpu.matmul %15, %17, %cst_11 {dimension_numbers = #tpu.dot_dimension_numbers<[1], [0], [0], [1], [0, 0, 1, 1], [], []>} : vector<128x128xf32>, vector<128x128xf32>, vector<128x128xf32> -> vector<128x128xf32>
    %19 = arith.addf %14, %18 : vector<128x128xf32>
    %c0_12 = arith.constant 0 : index
    %c0_13 = arith.constant 0 : index
    %20 = vector.load %arg3[%c0_12, %c0_13] : memref<1x128xf32, #tpu.memory_space<vmem>>, vector<1x128xf32>
    %21 = vector.broadcast %20 : vector<1x128xf32> to vector<128x128xf32>
    %22 = arith.addf %19, %21 : vector<128x128xf32>
    %cst_14 = arith.constant 0.000000e+00 : f32
    %23 = vector.broadcast %cst_14 : f32 to vector<128x128xf32>
    %24 = arith.maximumf %22, %23 : vector<128x128xf32>
    %25 = vector.shape_cast %24 : vector<128x128xf32> to vector<8x16x128xf32>
    %26 = vector.extract_strided_slice %25 {offsets = [0, 0, 0], sizes = [8, 15, 128], strides = [1, 1, 1]} : vector<8x16x128xf32> to vector<8x15x128xf32>
    %27 = tpu.concatenate %1, %26 in 1 : vector<8x1x128xf32>, vector<8x15x128xf32> -> vector<8x16x128xf32>
    %28 = vector.extract_strided_slice %25 {offsets = [0, 1, 0], sizes = [8, 15, 128], strides = [1, 1, 1]} : vector<8x16x128xf32> to vector<8x15x128xf32>
    %29 = tpu.concatenate %28, %1 in 1 : vector<8x15x128xf32>, vector<8x1x128xf32> -> vector<8x16x128xf32>
    %30 = vector.shape_cast %27 : vector<8x16x128xf32> to vector<128x128xf32>
    %c0_15 = arith.constant 0 : index
    %c0_16 = arith.constant 0 : index
    %c0_17 = arith.constant 0 : index
    %31 = vector.load %arg4[%c0_15, %c0_16, %c0_17] : memref<3x128x128xf32, #tpu.memory_space<vmem>>, vector<1x128x128xf32>
    %32 = vector.shape_cast %31 : vector<1x128x128xf32> to vector<128x128xf32>
    %cst_18 = arith.constant dense<0.000000e+00> : vector<128x128xf32>
    %33 = tpu.matmul %30, %32, %cst_18 {dimension_numbers = #tpu.dot_dimension_numbers<[1], [0], [0], [1], [0, 0, 1, 1], [], []>} : vector<128x128xf32>, vector<128x128xf32>, vector<128x128xf32> -> vector<128x128xf32>
    %34 = vector.shape_cast %25 : vector<8x16x128xf32> to vector<128x128xf32>
    %c1_19 = arith.constant 1 : index
    %c0_20 = arith.constant 0 : index
    %c0_21 = arith.constant 0 : index
    %35 = vector.load %arg4[%c1_19, %c0_20, %c0_21] : memref<3x128x128xf32, #tpu.memory_space<vmem>>, vector<1x128x128xf32>
    %36 = vector.shape_cast %35 : vector<1x128x128xf32> to vector<128x128xf32>
    %cst_22 = arith.constant dense<0.000000e+00> : vector<128x128xf32>
    %37 = tpu.matmul %34, %36, %cst_22 {dimension_numbers = #tpu.dot_dimension_numbers<[1], [0], [0], [1], [0, 0, 1, 1], [], []>} : vector<128x128xf32>, vector<128x128xf32>, vector<128x128xf32> -> vector<128x128xf32>
    %38 = arith.addf %33, %37 : vector<128x128xf32>
    %39 = vector.shape_cast %29 : vector<8x16x128xf32> to vector<128x128xf32>
    %c2_23 = arith.constant 2 : index
    %c0_24 = arith.constant 0 : index
    %c0_25 = arith.constant 0 : index
    %40 = vector.load %arg4[%c2_23, %c0_24, %c0_25] : memref<3x128x128xf32, #tpu.memory_space<vmem>>, vector<1x128x128xf32>
    %41 = vector.shape_cast %40 : vector<1x128x128xf32> to vector<128x128xf32>
    %cst_26 = arith.constant dense<0.000000e+00> : vector<128x128xf32>
    %42 = tpu.matmul %39, %41, %cst_26 {dimension_numbers = #tpu.dot_dimension_numbers<[1], [0], [0], [1], [0, 0, 1, 1], [], []>} : vector<128x128xf32>, vector<128x128xf32>, vector<128x128xf32> -> vector<128x128xf32>
    %43 = arith.addf %38, %42 : vector<128x128xf32>
    %c0_27 = arith.constant 0 : index
    %c0_28 = arith.constant 0 : index
    %44 = vector.load %arg5[%c0_27, %c0_28] : memref<1x128xf32, #tpu.memory_space<vmem>>, vector<1x128xf32>
    %45 = vector.broadcast %44 : vector<1x128xf32> to vector<128x128xf32>
    %46 = arith.addf %43, %45 : vector<128x128xf32>
    %47 = vector.shape_cast %46 : vector<128x128xf32> to vector<8x16x128xf32>
    %48 = arith.addf %47, %0 : vector<8x16x128xf32>
    %cst_29 = arith.constant 0.000000e+00 : f32
    %49 = vector.broadcast %cst_29 : f32 to vector<8x16x128xf32>
    %50 = arith.maximumf %48, %49 : vector<8x16x128xf32>
    %c0_30 = arith.constant 0 : index
    %c0_31 = arith.constant 0 : index
    %c0_32 = arith.constant 0 : index
    %51 = vector.load %arg6[%c0_30, %c0_31, %c0_32] : memref<8x16x128xf32, #tpu.memory_space<vmem>>, vector<8x16x128xf32>
    tpu.vector_store %arg6[%c0_30, %c0_31, %c0_32], %50 {strides = array<i32>} : memref<8x16x128xf32, #tpu.memory_space<vmem>>, vector<8x16x128xf32>,
    return
  }
  func.func @transform_0(%arg0: i32) -> (i32, i32, i32) {
    %c0_i32 = arith.constant 0 : i32
    %c0_i32_0 = arith.constant 0 : i32
    %c0_i32_1 = arith.constant 0 : i32
    return %arg0, %c0_i32, %c0_i32_0 : i32, i32, i32
  }
  func.func @transform_1(%arg0: i32) -> (i32, i32, i32) {
    %c0_i32 = arith.constant 0 : i32
    %c0_i32_0 = arith.constant 0 : i32
    %c0_i32_1 = arith.constant 0 : i32
    %c0_i32_2 = arith.constant 0 : i32
    return %c0_i32, %c0_i32_0, %c0_i32_1 : i32, i32, i32
  }
  func.func @transform_2(%arg0: i32) -> (i32, i32) {
    %c0_i32 = arith.constant 0 : i32
    %c0_i32_0 = arith.constant 0 : i32
    %c0_i32_1 = arith.constant 0 : i32
    return %c0_i32, %c0_i32_0 : i32, i32
  }
  func.func @transform_3(%arg0: i32) -> (i32, i32, i32) {
    %c0_i32 = arith.constant 0 : i32
    %c0_i32_0 = arith.constant 0 : i32
    %c0_i32_1 = arith.constant 0 : i32
    %c0_i32_2 = arith.constant 0 : i32
    return %c0_i32, %c0_i32_0, %c0_i32_1 : i32, i32, i32
  }
  func.func @transform_4(%arg0: i32) -> (i32, i32) {
    %c0_i32 = arith.constant 0 : i32
    %c0_i32_0 = arith.constant 0 : i32
    %c0_i32_1 = arith.constant 0 : i32
    return %c0_i32, %c0_i32_0 : i32, i32
  }
  func.func @transform_5(%arg0: i32) -> (i32, i32, i32) {
    %c0_i32 = arith.constant 0 : i32
    %c0_i32_0 = arith.constant 0 : i32
    %c0_i32_1 = arith.constant 0 : i32
    return %arg0, %c0_i32, %c0_i32_0 : i32, i32, i32
  }
}

module attributes {stable_mosaic.version = 11 : i64} {
  func.func @residual_block_kernel(%arg0: i32, %arg1: memref<8x16x128xf32, #tpu.memory_space<vmem>>, %arg2: memref<3x128x128xf32, #tpu.memory_space<vmem>>, %arg3: memref<1x128xf32, #tpu.memory_space<vmem>>, %arg4: memref<3x128x128xf32, #tpu.memory_space<vmem>>, %arg5: memref<1x128xf32, #tpu.memory_space<vmem>>, %arg6: memref<8x16x128xf32, #tpu.memory_space<vmem>>) attributes {dimension_semantics = [#tpu.dimension_semantics<parallel>], iteration_bounds = array<i64: 2>, scalar_prefetch = 0 : i64, scratch_operands = 0 : i64, tpu.core_type = #tpu.core_type<tc>, window_params = [{transform_indices = @transform_0, window_bounds = array<i64: 8, 16, 128>}, {pipeline_mode = #tpu.pipeline_mode<synchronous>, transform_indices = @transform_1, window_bounds = array<i64: 3, 128, 128>}, {pipeline_mode = #tpu.pipeline_mode<synchronous>, transform_indices = @transform_2, window_bounds = array<i64: 1, 128>}, {pipeline_mode = #tpu.pipeline_mode<synchronous>, transform_indices = @transform_3, window_bounds = array<i64: 3, 128, 128>}, {pipeline_mode = #tpu.pipeline_mode<synchronous>, transform_indices = @transform_4, window_bounds = array<i64: 1, 128>}, {transform_indices = @transform_5, window_bounds = array<i64: 8, 16, 128>}]} {
    %c0 = arith.constant 0 : index
    %c0_0 = arith.constant 0 : index
    %c0_1 = arith.constant 0 : index
    %0 = vector.load %arg1[%c0, %c0_0, %c0_1] : memref<8x16x128xf32, #tpu.memory_space<vmem>>, vector<8x16x128xf32>
    %cst = arith.constant 0.000000e+00 : f32
    %1 = vector.broadcast %cst : f32 to vector<8x1x128xf32>
    %2 = vector.extract_strided_slice %0 {offsets = [0, 0, 0], sizes = [8, 15, 128], strides = [1, 1, 1]} : vector<8x16x128xf32> to vector<8x15x128xf32>
    %3 = tpu.concatenate %1, %2 in 1 : vector<8x1x128xf32>, vector<8x15x128xf32> -> vector<8x16x128xf32>
    %4 = vector.extract_strided_slice %0 {offsets = [0, 1, 0], sizes = [8, 15, 128], strides = [1, 1, 1]} : vector<8x16x128xf32> to vector<8x15x128xf32>
    %5 = tpu.concatenate %4, %1 in 1 : vector<8x15x128xf32>, vector<8x1x128xf32> -> vector<8x16x128xf32>
    %6 = vector.shape_cast %3 : vector<8x16x128xf32> to vector<128x128xf32>
    %c0_2 = arith.constant 0 : index
    %c0_3 = arith.constant 0 : index
    %c0_4 = arith.constant 0 : index
    %7 = vector.load %arg2[%c0_2, %c0_3, %c0_4] : memref<3x128x128xf32, #tpu.memory_space<vmem>>, vector<1x128x128xf32>
    %8 = vector.shape_cast %7 : vector<1x128x128xf32> to vector<128x128xf32>
    %cst_5 = arith.constant dense<0.000000e+00> : vector<128x128xf32>
    %9 = tpu.matmul %6, %8, %cst_5 {dimension_numbers = #tpu.dot_dimension_numbers<[1], [0], [0], [1], [0, 0, 1, 1], [], []>} : vector<128x128xf32>, vector<128x128xf32>, vector<128x128xf32> -> vector<128x128xf32>
    %10 = vector.shape_cast %0 : vector<8x16x128xf32> to vector<128x128xf32>
    %c1 = arith.constant 1 : index
    %c0_6 = arith.constant 0 : index
    %c0_7 = arith.constant 0 : index
    %11 = vector.load %arg2[%c1, %c0_6, %c0_7] : memref<3x128x128xf32, #tpu.memory_space<vmem>>, vector<1x128x128xf32>
    %12 = vector.shape_cast %11 : vector<1x128x128xf32> to vector<128x128xf32>
    %cst_8 = arith.constant dense<0.000000e+00> : vector<128x128xf32>
    %13 = tpu.matmul %10, %12, %cst_8 {dimension_numbers = #tpu.dot_dimension_numbers<[1], [0], [0], [1], [0, 0, 1, 1], [], []>} : vector<128x128xf32>, vector<128x128xf32>, vector<128x128xf32> -> vector<128x128xf32>
    %14 = arith.addf %9, %13 : vector<128x128xf32>
    %15 = vector.shape_cast %5 : vector<8x16x128xf32> to vector<128x128xf32>
    %c2 = arith.constant 2 : index
    %c0_9 = arith.constant 0 : index
    %c0_10 = arith.constant 0 : index
    %16 = vector.load %arg2[%c2, %c0_9, %c0_10] : memref<3x128x128xf32, #tpu.memory_space<vmem>>, vector<1x128x128xf32>
    %17 = vector.shape_cast %16 : vector<1x128x128xf32> to vector<128x128xf32>
    %cst_11 = arith.constant dense<0.000000e+00> : vector<128x128xf32>
    %18 = tpu.matmul %15, %17, %cst_11 {dimension_numbers = #tpu.dot_dimension_numbers<[1], [0], [0], [1], [0, 0, 1, 1], [], []>} : vector<128x128xf32>, vector<128x128xf32>, vector<128x128xf32> -> vector<128x128xf32>
    %19 = arith.addf %14, %18 : vector<128x128xf32>
    %c0_12 = arith.constant 0 : index
    %c0_13 = arith.constant 0 : index
    %20 = vector.load %arg3[%c0_12, %c0_13] : memref<1x128xf32, #tpu.memory_space<vmem>>, vector<1x128xf32>
    %21 = vector.broadcast %20 : vector<1x128xf32> to vector<128x128xf32>
    %22 = arith.addf %19, %21 : vector<128x128xf32>
    %cst_14 = arith.constant 0.000000e+00 : f32
    %23 = vector.broadcast %cst_14 : f32 to vector<128x128xf32>
    %24 = arith.maximumf %22, %23 : vector<128x128xf32>
    %25 = vector.shape_cast %24 : vector<128x128xf32> to vector<8x16x128xf32>
    %26 = vector.extract_strided_slice %25 {offsets = [0, 0, 0], sizes = [8, 15, 128], strides = [1, 1, 1]} : vector<8x16x128xf32> to vector<8x15x128xf32>
    %27 = tpu.concatenate %1, %26 in 1 : vector<8x1x128xf32>, vector<8x15x128xf32> -> vector<8x16x128xf32>
    %28 = vector.extract_strided_slice %25 {offsets = [0, 1, 0], sizes = [8, 15, 128], strides = [1, 1, 1]} : vector<8x16x128xf32> to vector<8x15x128xf32>
    %29 = tpu.concatenate %28, %1 in 1 : vector<8x15x128xf32>, vector<8x1x128xf32> -> vector<8x16x128xf32>
    %30 = vector.shape_cast %27 : vector<8x16x128xf32> to vector<128x128xf32>
    %c0_15 = arith.constant 0 : index
    %c0_16 = arith.constant 0 : index
    %c0_17 = arith.constant 0 : index
    %31 = vector.load %arg4[%c0_15, %c0_16, %c0_17] : memref<3x128x128xf32, #tpu.memory_space<vmem>>, vector<1x128x128xf32>
    %32 = vector.shape_cast %31 : vector<1x128x128xf32> to vector<128x128xf32>
    %cst_18 = arith.constant dense<0.000000e+00> : vector<128x128xf32>
    %33 = tpu.matmul %30, %32, %cst_18 {dimension_numbers = #tpu.dot_dimension_numbers<[1], [0], [0], [1], [0, 0, 1, 1], [], []>} : vector<128x128xf32>, vector<128x128xf32>, vector<128x128xf32> -> vector<128x128xf32>
    %34 = vector.shape_cast %25 : vector<8x16x128xf32> to vector<128x128xf32>
    %c1_19 = arith.constant 1 : index
    %c0_20 = arith.constant 0 : index
    %c0_21 = arith.constant 0 : index
    %35 = vector.load %arg4[%c1_19, %c0_20, %c0_21] : memref<3x128x128xf32, #tpu.memory_space<vmem>>, vector<1x128x128xf32>
    %36 = vector.shape_cast %35 : vector<1x128x128xf32> to vector<128x128xf32>
    %cst_22 = arith.constant dense<0.000000e+00> : vector<128x128xf32>
    %37 = tpu.matmul %34, %36, %cst_22 {dimension_numbers = #tpu.dot_dimension_numbers<[1], [0], [0], [1], [0, 0, 1, 1], [], []>} : vector<128x128xf32>, vector<128x128xf32>, vector<128x128xf32> -> vector<128x128xf32>
    %38 = arith.addf %33, %37 : vector<128x128xf32>
    %39 = vector.shape_cast %29 : vector<8x16x128xf32> to vector<128x128xf32>
    %c2_23 = arith.constant 2 : index
    %c0_24 = arith.constant 0 : index
    %c0_25 = arith.constant 0 : index
    %40 = vector.load %arg4[%c2_23, %c0_24, %c0_25] : memref<3x128x128xf32, #tpu.memory_space<vmem>>, vector<1x128x128xf32>
    %41 = vector.shape_cast %40 : vector<1x128x128xf32> to vector<128x128xf32>
    %cst_26 = arith.constant dense<0.000000e+00> : vector<128x128xf32>
    %42 = tpu.matmul %39, %41, %cst_26 {dimension_numbers = #tpu.dot_dimension_numbers<[1], [0], [0], [1], [0, 0, 1, 1], [], []>} : vector<128x128xf32>, vector<128x128xf32>, vector<128x128xf32> -> vector<128x128xf32>
    %43 = arith.addf %38, %42 : vector<128x128xf32>
    %c0_27 = arith.constant 0 : index
    %c0_28 = arith.constant 0 : index
    %44 = vector.load %arg5[%c0_27, %c0_28] : memref<1x128xf32, #tpu.memory_space<vmem>>, vector<1x128xf32>
    %45 = vector.broadcast %44 : vector<1x128xf32> to vector<128x128xf32>
    %46 = arith.addf %43, %45 : vector<128x128xf32>
    %47 = vector.shape_cast %46 : vector<128x128xf32> to vector<8x16x128xf32>
    %48 = arith.addf %47, %0 : vector<8x16x128xf32>
    %cst_29 = arith.constant 0.000000e+00 : f32
    %49 = vector.broadcast %cst_29 : f32 to vector<8x16x128xf32>
    %50 = arith.maximumf %48, %49 : vector<8x16x128xf32>
    %c0_30 = arith.constant 0 : index
    %c0_31 = arith.constant 0 : index
    %c0_32 = arith.constant 0 : index
    %51 = vector.load %arg6[%c0_30, %c0_31, %c0_32] : memref<8x16x128xf32, #tpu.memory_space<vmem>>, vector<8x16x128xf32>
    tpu.vector_store %arg6[%c0_30, %c0_31, %c0_32], %50 {strides = array<i32>} : memref<8x16x128xf32, #tpu.memory_space<vmem>>, vector<8x16x128xf32>,
    return
  }
  func.func @transform_0(%arg0: i32) -> (i32, i32, i32) {
    %c0_i32 = arith.constant 0 : i32
    %c0_i32_0 = arith.constant 0 : i32
    %c0_i32_1 = arith.constant 0 : i32
    return %arg0, %c0_i32, %c0_i32_0 : i32, i32, i32
  }
  func.func @transform_1(%arg0: i32) -> (i32, i32, i32) {
    %c0_i32 = arith.constant 0 : i32
    %c0_i32_0 = arith.constant 0 : i32
    %c0_i32_1 = arith.constant 0 : i32
    %c0_i32_2 = arith.constant 0 : i32
    return %c0_i32, %c0_i32_0, %c0_i32_1 : i32, i32, i32
  }
  func.func @transform_2(%arg0: i32) -> (i32, i32) {
    %c0_i32 = arith.constant 0 : i32
    %c0_i32_0 = arith.constant 0 : i32
    %c0_i32_1 = arith.constant 0 : i32
    return %c0_i32, %c0_i32_0 : i32, i32
  }
  func.func @transform_3(%arg0: i32) -> (i32, i32, i32) {
    %c0_i32 = arith.constant 0 : i32
    %c0_i32_0 = arith.constant 0 : i32
    %c0_i32_1 = arith.constant 0 : i32
    %c0_i32_2 = arith.constant 0 : i32
    return %c0_i32, %c0_i32_0, %c0_i32_1 : i32, i32, i32
  }
  func.func @transform_4(%arg0: i32) -> (i32, i32) {
    %c0_i32 = arith.constant 0 : i32
    %c0_i32_0 = arith.constant 0 : i32
    %c0_i32_1 = arith.constant 0 : i32
    return %c0_i32, %c0_i32_0 : i32, i32
  }
  func.func @transform_5(%arg0: i32) -> (i32, i32, i32) {
    %c0_i32 = arith.constant 0 : i32
    %c0_i32_0 = arith.constant 0 : i32
    %c0_i32_1 = arith.constant 0 : i32
    return %arg0, %c0_i32, %c0_i32_0 : i32, i32, i32
  }
}

</mosaic_0001>

<bundles_post_ra>
// kernel: tpu_custom_call.1
= control target key start
LH: loop header
LB: loop body
LE: loop exit
PB: predicated region body
PF: predicated region fallthrough
CT: control target
= control target key end

     0   :  { %10 = vsyncpa [#allocation3], 0  ;;  %s3550_s0 = inlined_call_operand.hbm [shape: f32[16,16,128], index: 0, kind: input, shape index: {}]   ;;  %s3551_s1 = inlined_call_operand.hbm [shape: f32[3,128,128], index: 1, kind: input, shape index: {}]   ;;  %s3552_s2 = inlined_call_operand.vmem [shape: f32[1,128], index: 2, kind: input, shape index: {}]   ;;  %s3553_s3 = inlined_call_operand.hbm [shape: f32[3,128,128], index: 3, kind: input, shape index: {}]   ;;  %s3554_s4 = inlined_call_operand.vmem [shape: f32[1,128], index: 4, kind: input, shape index: {}]   ;;  %s3555_s5 = inlined_call_operand.hbm [shape: f32[16,16,128], index: 5, kind: output, shape index: {}]  }
   0x1   :  { %12 = vsyncpa [#allocation3 + $0x1], 0 }
   0x2   :  { %13 = vsyncpa [#allocation6], 0 }
   0x3   :  { %14 = vsyncpa [#allocation4], 0 }
   0x4   :  { %16 = vsyncpa [#allocation4 + $0x1], 0  ;;  %s2861_s18 = smov 0   ;;  %s2863_s19 = smov 0  }
   0x5   :  { %s2865_s20 = smov 0   ;;  %s2867_s21 = smov 0  }
   0x6 LB: > { %s2882_s22 = sadd.s32 4294967295, %s2821_s21   ;;  %s1736_s23 = sadd.s32 4294967294, %s2821_s21   ;;  %s2821_s21 = sphi %s2867_s21, %s3595_s21   ;;  %s2817_s20 = sphi %s2865_s20, %s3594_s20   ;;  %s2813_s19 = sphi %s2863_s19, %s3593_s19   ;;  %s2809_s18 = sphi %s2861_s18, %s3592_s18  }
   0x7   : > { %p42_p0 = scmp.ne.s32.totalorder %s2813_s19, %s2809_s18  ;;  %p3556_p1 = scmp.eq.s32.totalorder %s2882_s22, 0 }
   0x8   : > { %p156_p3 = scmp.eq.s32.totalorder %s1736_s23, 1  ;;  %p1737_p5 = scmp.ge.s32.totalorder %s2821_s21, 1 }
   0x9   : > { %p2891_p4 = por %p3556_p1, %p42_p0  ;;  %p163_p7 = scmp.lt.s32.totalorder %s2821_s21, 3 }
   0xa   : > { %p2896_p6 = por %p156_p3, %p42_p0  ;;  %s2823_s27 = smov [#allocation5]  }
   0xb   : > { %s3568_s24 = scalar_select %p2891_p4, 1, 0 }
   0xc   : > { %s3569_s25 = scalar_select %p2896_p6, 1, 0 }
   0xd   : > { %p2901_p8 = pnand %p1737_p5, %p163_p7  ;;  %s175_s28 = sshll.u32 %s2823_s27, 4  ;;  %s2905_s28 = int_to_ptr.vmem [resolvable:$true] %s175_s28 }
   0xe   : > { %s2824_s30 = smov [#allocation7]   ;;  %s2665_s9 = scalar_lea.hbm %s3551_s1, 6144 }
   0xf   : > { %p2606_p9 = pneg %p2901_p8  ;;  %s191_s6 = sshll.u32 %s2824_s30, 4  ;;  %s2916_s6 = int_to_ptr.vmem [resolvable:$true] %s191_s6 }
  0x10   : > { %p2666_p12 = scmp.ne.s32.totalorder %s3551_s1, %s2665_s9  ;;  %p2672_p5 = scmp.lt.u32.totalorder %s2665_s9, %s3551_s1 }
  0x11   : > { %p2912_p11 = pnand %p2606_p9, %p3556_p1 }
  0x13   : > { %p2667_p13 = pneg %p2912_p11 }
  0x15   : > { %p2668_p0 = pnand %p2667_p13, %p2666_p12 }
  0x17   : > { %p2669_p3 = pneg %p2668_p0 }
  0x19   : > { %p2674_p7 = pnand %p2672_p5, %p2669_p3 }
  0x1b   : > { %2677 = shalt.err (!%p2674_p7)
}
  0x1c   : > { %s2678_s14 = scalar_lea.vmem %s2905_s28, 6144  ;;  %p2686_p2 = scmp.lt.s32.totalorder %s2905_s28, %s2905_s28 }
  0x1d   : > { %p2679_p9 = scmp.ne.s32.totalorder %s2905_s28, %s2678_s14  ;;  %p2687_p12 = scmp.lt.s32.totalorder %s2678_s14, %s2678_s14 }
  0x1f   : > { %p2681_p10 = pnand %p2679_p9, %p2667_p13  ;;  %p2688_p0 = por %p2687_p12, %p2686_p2 }
  0x21   : > { %p2682_p1 = pneg %p2681_p10 }
  0x23   : > { %p2689_p6 = pnand %p2688_p0, %p2682_p1 }
  0x25   : > { %2692 = shalt.err (!%p2689_p6)
}
  0x26   : > { %s2825_s15 = smov 128   ;;  %s2826_s16 = smov 8  }
  0x27   : > { %2609 = dma.hbm_to_vmem [thread:$0]  (!%p2912_p11), %s3551_s1, 6144, %s2905_s28, [#allocation6], %s2825_s15, %s2825_s15, %s2826_s16  }
  0x28   : > { %s2693_s7 = scalar_lea.hbm %s3553_s3, 6144 }
  0x29   : > { %p2694_p1 = scmp.ne.s32.totalorder %s3553_s3, %s2693_s7  ;;  %p2700_p10 = scmp.lt.u32.totalorder %s2693_s7, %s3553_s3 }
  0x2b   : > { %p2696_p2 = pnand %p2694_p1, %p2667_p13 }
  0x2d   : > { %p2697_p6 = pneg %p2696_p2 }
  0x2f   : > { %p2702_p3 = pnand %p2700_p10, %p2697_p6 }
  0x31   : > { %2705 = shalt.err (!%p2702_p3)
}
  0x32   : > { %s2706_s28 = scalar_lea.vmem %s2916_s6, 6144  ;;  %p2714_p12 = scmp.lt.s32.totalorder %s2916_s6, %s2916_s6 }
  0x33   : > { %p2707_p5 = scmp.ne.s32.totalorder %s2916_s6, %s2706_s28  ;;  %p2715_p0 = scmp.lt.s32.totalorder %s2706_s28, %s2706_s28 }
  0x35   : > { %p2709_p7 = pnand %p2707_p5, %p2667_p13  ;;  %p2716_p1 = por %p2715_p0, %p2714_p12 }
  0x37   : > { %p2710_p9 = pneg %p2709_p7 }
  0x39   : > { %p2717_p2 = pnand %p2716_p1, %p2710_p9 }
  0x3b   : > { %2720 = shalt.err (!%p2717_p2)
}
  0x3c   : > { %2612 = dma.hbm_to_vmem [thread:$0]  (!%p2912_p11), %s3553_s3, 6144, %s2916_s6, [#allocation6], %s2825_s15, %s2825_s15, %s2826_s16  }
  0x3d   : > { %s2977_s29 = sadd.s32 1, %s2821_s21   ;;  %s29_s14 = sadd.s32 1, %s2817_s20 }
  0x3e   : > { %s26_s17 = ssub.s32 %s2821_s21, %s2977_s29  ;;  %p36_p13 = scmp.ne.s32.totalorder %s2817_s20, %s2813_s19 }
  0x3f   : > { %p27_p6 = scmp.eq.s32.totalorder %s26_s17, 0  ;;  %p37_p10 = scmp.eq.s32.totalorder %s2821_s21, 0 }
  0x40   : > { %p3572_p3 = scmp.eq.s32.totalorder %s2882_s22, 1  ;;  %p2623_p7 = scmp.lt.s32.totalorder %s2821_s21, 2 }
  0x41   : > { %s2993_s27 = scalar_select %p27_p6, %s2817_s20, %s29_s14  }
  0x42   : > { %p2987_p5 = por %p3572_p3, %p36_p13  ;;  %p38_p9 = por %p37_p10, %p36_p13 }
  0x43   : > { %s208_s30 = sand.u32 1, %s2817_s20   ;;  %s1807_s6 = sshll.u32 %s2821_s21, 11 }
  0x44   : > { %s3573_s23 = scalar_select %p2987_p5, 1, 0 }
  0x45   : > { %s1741_s7 = sshll.u32 %s208_s30, 7  ;;  %s3000_s10 = scalar_lea.hbm %s3550_s0, %s1807_s6 }
  0x46   : > { %s212_s11 = scalar_lea.vmem [#allocation2], %s1741_s7  ;;  %p3004_p11 = pnand %p2623_p7, %p38_p9 }
  0x47   : > { %s220_s28 = sshll.u32 %s212_s11, 4  ;;  %s3008_s13 = scalar_lea.sflag [#allocation3], %s208_s30  ;;  %s3002_s28 = int_to_ptr.vmem [resolvable:$true] %s220_s28 }
  0x48   : > { %s2721_s14 = scalar_lea.hbm %s3000_s10, 2048  ;;  %p2723_p0 = pneg %p3004_p11 }
  0x49   : > { %p2722_p12 = scmp.ne.s32.totalorder %s3000_s10, %s2721_s14  ;;  %s2726_s6 = scalar_lea.hbm %s3550_s0, 4096 }
  0x4a   : > { %p2727_p13 = scmp.lt.u32.totalorder %s3000_s10, %s3550_s0  ;;  %p2728_p6 = scmp.lt.u32.totalorder %s2726_s6, %s2721_s14 }
  0x4b   : > { %p2724_p1 = pnand %p2723_p0, %p2722_p12  ;;  %p2730_p3 = scmp.lt.u32.totalorder %s2721_s14, %s3000_s10 }
  0x4c   : > { %p2729_p10 = por %p2728_p6, %p2727_p13 }
  0x4d   : > { %p2725_p2 = pneg %p2724_p1 }
  0x4e   : > { %p2731_p7 = por %p2730_p3, %p2729_p10 }
  0x50   : > { %p2732_p9 = pnand %p2731_p7, %p2725_p2 }
  0x52   : > { %2735 = shalt.err (!%p2732_p9)
}
  0x53   : > { %s2736_s30 = scalar_lea.vmem %s3002_s28, 2048  ;;  %s2827_s11 = smov [#allocation2]  }
  0x54   : > { %p2737_p12 = scmp.ne.s32.totalorder %s3002_s28, %s2736_s30  ;;  %s2741_s17 = sshll.u32 %s2827_s11, 4  ;;  %s2742_s17 = int_to_ptr.vmem [resolvable:$false] %s2741_s17 }
  0x55   : > { %s2743_s7 = scalar_lea.vmem %s2742_s17, 4096  ;;  %p2744_p4 = scmp.lt.s32.totalorder %s3002_s28, %s2742_s17 }
  0x56   : > { %p2739_p1 = pnand %p2737_p12, %p2723_p0  ;;  %p2745_p13 = scmp.lt.s32.totalorder %s2743_s7, %s2736_s30 }
  0x58   : > { %p2740_p5 = pneg %p2739_p1  ;;  %p2746_p6 = por %p2745_p13, %p2744_p4 }
  0x5a   : > { %p2747_p10 = pnand %p2746_p6, %p2740_p5 }
  0x5c   : > { %2750 = shalt.err (!%p2747_p10)
}
  0x5d   : > { %2616 = dma.hbm_to_vmem [thread:$0]  (!%p3004_p11), %s3000_s10, 2048, %s3002_s28, %s3008_s13, %s2825_s15, %s2825_s15, %s2826_s16  }
  0x5e   : > { %232 = sbr.rel (%p2901_p8) target bundleno = 748 (0x2ec), region = 40  ;;  %s3042_s14 = sand.u32 (!%p2901_p8), 1, %s2813_s19  }
  0x5f   : > { %s1746_s6 = sshll.u32 (!%p2901_p8), %s3042_s14, 7  ;;  %s235_s8 = scalar_lea.sflag (!%p2901_p8), [#allocation3], %s3042_s14 }
  0x60   : > { %s3048_s12 = scalar_lea.vmem (!%p2901_p8), [#allocation2], %s1746_s6  ;;  %p3575_p4 = scmp.ne.s32.totalorder (!%p2901_p8), %s3568_s24, 0 }
  0x65   : > { %2796 = dma.done.wait (%p3575_p4), %s235_s8, 2048  }
  0x66   : > { %2798 = vsyncadd (%p3575_p4), %s235_s8, 4294965248  ;;  %p3576_p5 = scmp.eq.s32.totalorder %s2882_s22, 0 }
  0x68   : > { %2800 = dma.done.wait (%p3576_p5), [#allocation6], 12288   ;;  %p3577_p8 = pmov %p3576_p5 }
  0x69   : > { %v422_v0 = vld [vmem:[#allocation5 + $0x80] sm:$0xff]  ;;  %v423_v1 = vld [vmem:[#allocation5 + $0x88] sm:$0xff]  ;;  %v424_v2 = vld [vmem:[#allocation5 + $0x90] sm:$0xff]  ;;  %vm307_vm0 = vcmask 1040384   ;;  %vm356_vm2 = vcmask 1046528   ;;  %s3455_s10 = scalar_lea.vmem [#allocation8], %s1746_s6 }
  0x6a   : > { %2802 = vsyncadd (%p3577_p8), [#allocation6], 4294955008  ;;  %v2338_v3 = vpack.c.bf16 %v423_v1, %v422_v0  ;;  %v425_v4 = vld [vmem:[#allocation5 + $0x98] sm:$0xff]  ;;  %v426_v6 = vld [vmem:[#allocation5 + $0xa0] sm:$0xff]  ;;  %s1809_s28 = sshll.u32 %s2882_s22, 11  ;;  %s1644_s13 = sshll.u32 %s3455_s10, 4  ;;  %s3504_s13 = int_to_ptr.vmem [resolvable:$true] %s1644_s13 }
  0x6b   : > { %v2342_v5 = vpack.c.bf16 %v425_v4, %v424_v2  ;;  %v427_v7 = vld [vmem:[#allocation5 + $0xa8] sm:$0xff]  ;;  %v3059_v9 = vld [vmem:[%s3048_s12] sm:$0xff]  ;;  %v428_v10 = vld [vmem:[#allocation5 + $0xb0] sm:$0xff]  ;;  %s3502_s11 = scalar_lea.hbm %s3555_s5, %s1809_s28  ;;  %s1630_s22 = scalar_lea.sflag [#allocation4], %s3042_s14 }
  0x6c   : > { %2339 = vmatprep.subr.bf16.mxu0 %v2338_v3  ;;  %v2346_v8 = vpack.c.bf16 %v427_v7, %v426_v6  ;;  %v429_v11 = vld [vmem:[#allocation5 + $0xb8] sm:$0xff]  ;;  %2034 = vmatprep.mubr.f32.mxu0 %v3059_v9  ;;  %v430_v13 = vld [vmem:[#allocation5 + $0xc0] sm:$0xff]  ;;  %v431_v14 = vld [vmem:[#allocation5 + $0xc8] sm:$0xff]  ;;  %s2751_s17 = scalar_lea.vmem %s3504_s13, 2048  ;;  %p3589_p0 = scmp.ne.s32.totalorder %s3573_s23, 0 }
  0x6d   : > { %2341 = vmatpush3.bf16.msra.mxu0 %v2338_v3  ;;  %v2350_v12 = vpack.c.bf16 %v429_v11, %v428_v10  ;;  %v2354_v15 = vpack.c.bf16 %v431_v14, %v430_v13  ;;  %v432_v16 = vld [vmem:[#allocation5 + $0xd0] sm:$0xff]  ;;  %v433_v17 = vld [vmem:[#allocation5 + $0xd8] sm:$0xff]  ;;  %v434_v19 = vld [vmem:[#allocation5 + $0xe0] sm:$0xff]  ;;  %p2752_p11 = scmp.ne.s32.totalorder %s3504_s13, %s2751_s17  ;;  %s2828_s7 = smov [#allocation8]  }
  0x6e   : > { %2343 = vmatprep.subr.bf16.mxu0 %v2342_v5  ;;  %v2358_v18 = vpack.c.bf16 %v433_v17, %v432_v16  ;;  %v435_v20 = vld [vmem:[#allocation5 + $0xe8] sm:$0xff]  ;;  %v436_v22 = vld [vmem:[#allocation5 + $0xf0] sm:$0xff]  ;;  %v1074_v23 = vld [vmem:[#allocation7 + $0x80] sm:$0xff]  ;;  %s2755_s6 = sshll.u32 %s2828_s7, 4  ;;  %s2756_s6 = int_to_ptr.vmem [resolvable:$false] %s2755_s6 }
  0x6f   : > { %v2362_v21 = vpack.c.bf16 %v435_v20, %v434_v19  ;;  %v1075_v24 = vld [vmem:[#allocation7 + $0x88] sm:$0xff]  ;;  %v437_v25 = vld [vmem:[#allocation5 + $0xf8] sm:$0xff]  ;;  %v1076_v27 = vld [vmem:[#allocation7 + $0x90] sm:$0xff]  ;;  %p2753_p2 = pnand %p2752_p11, %p3589_p0  ;;  %s2757_s8 = scalar_lea.vmem %s2756_s6, 4096 }
  0x70   : > { %v2434_v26 = vpack.c.bf16 %v1075_v24, %v1074_v23  ;;  %v1077_v28 = vld [vmem:[#allocation7 + $0x98] sm:$0xff]  ;;  %v1078_v30 = vld [vmem:[#allocation7 + $0xa0] sm:$0xff]  ;;  %v1079_v31 = vld [vmem:[#allocation7 + $0xa8] sm:$0xff]  ;;  %v2366_v32 = vpack.c.bf16 %v437_v25, %v436_v22  ;;  %v308_v25 = vrot.slane %v3059_v9, 7  ;;  %p2758_p7 = scmp.lt.s32.totalorder %s3504_s13, %s2756_s6  ;;  %p2759_p9 = scmp.lt.s32.totalorder %s2757_s8, %s2751_s17 }
  0x71   : > { %2345 = vmatpush3.bf16.msra.mxu0 %v2342_v5  ;;  %v2438_v29 = vpack.c.bf16 %v1077_v28, %v1076_v27  ;;  %v405_v33 = vld [vmem:[#allocation5] sm:$0xff]  ;;  %v406_v34 = vld [vmem:[#allocation5 + $0x8] sm:$0xff]  ;;  %v2442_v35 = vpack.c.bf16 %v1079_v31, %v1078_v30  ;;  %v1080_v36 = vld [vmem:[#allocation7 + $0xb0] sm:$0xff]  ;;  %p2754_p3 = pneg %p2753_p2 }
  0x72   : > { %2347 = vmatprep.subr.bf16.mxu0 %v2346_v8  ;;  %2435 = vmatprep.subr.bf16.mxu1 %v2434_v26  ;;  %v1081_v37 = vld [vmem:[#allocation7 + $0xb8] sm:$0xff]  ;;  %v2370_v38 = vpack.c.bf16 %v406_v34, %v405_v33  ;;  %v407_v39 = vld [vmem:[#allocation5 + $0x10] sm:$0xff]  ;;  %v1082_v42 = vld [vmem:[#allocation7 + $0xc0] sm:$0xff]  ;;  %p2760_p12 = por %p2759_p9, %p2758_p7 }
  0x73   : > { %2437 = vmatpush3.bf16.msra.mxu1 %v2434_v26  ;;  %v408_v40 = vld [vmem:[#allocation5 + $0x18] sm:$0xff]  ;;  %v2446_v41 = vpack.c.bf16 %v1081_v37, %v1080_v36  ;;  %v1083_v43 = vld [vmem:[#allocation7 + $0xc8] sm:$0xff]  ;;  %v3066_v45 = vld [vmem:[%s3048_s12 + $0x10] sm:$0xff] }
  0x74   : > { %2439 = vmatprep.subr.bf16.mxu1 %v2438_v29  ;;  %v3063_v44 = vld [vmem:[%s3048_s12 + $0x8] sm:$0xff]  ;;  %v2374_v46 = vpack.c.bf16 %v408_v40, %v407_v39  ;;  %v409_v47 = vld [vmem:[#allocation5 + $0x20] sm:$0xff]  ;;  %v2450_v49 = vpack.c.bf16 %v1083_v43, %v1082_v42  ;;  %v1084_v50 = vld [vmem:[#allocation7 + $0xd0] sm:$0xff]  ;;  %v311_v31 = vrot.slane %v3066_v45, 7  ;;  %p2761_p1 = pnand %p2760_p12, %p2754_p3 }
  0x75   : > { %2349 = vmatpush3.bf16.msra.mxu0 %v2346_v8  ;;  %v410_v48 = vld [vmem:[#allocation5 + $0x28] sm:$0xff]  ;;  %v1085_v51 = vld [vmem:[#allocation7 + $0xd8] sm:$0xff]  ;;  %v3074_v53 = vld [vmem:[%s3048_s12 + $0x20] sm:$0xff]  ;;  %v309_v23 = vrot.slane %v3063_v44, 7 }
  0x76   : > { %2351 = vmatprep.subr.bf16.mxu0 %v2350_v12  ;;  %v3071_v52 = vld [vmem:[%s3048_s12 + $0x18] sm:$0xff]  ;;  %v2378_v54 = vpack.c.bf16 %v410_v48, %v409_v47  ;;  %v411_v55 = vld [vmem:[#allocation5 + $0x30] sm:$0xff]  ;;  %v2454_v57 = vpack.c.bf16 %v1085_v51, %v1084_v50  ;;  %v1086_v58 = vld [vmem:[#allocation7 + $0xe0] sm:$0xff]  ;;  %v314_v37 = vrot.slane %v3074_v53, 7 }
  0x77   : > { %2441 = vmatpush3.bf16.msra.mxu1 %v2438_v29  ;;  %v412_v56 = vld [vmem:[#allocation5 + $0x38] sm:$0xff]  ;;  %v1087_v59 = vld [vmem:[#allocation7 + $0xe8] sm:$0xff]  ;;  %v3082_v61 = vld [vmem:[%s3048_s12 + $0x30] sm:$0xff]  ;;  %v310_v30 = vsel %vm307_vm0, %v308_v25, %v309_v23 }
  0x78   : > { %2443 = vmatprep.subr.bf16.mxu1 %v2442_v35  ;;  %v3079_v60 = vld [vmem:[%s3048_s12 + $0x28] sm:$0xff]  ;;  %v2382_v62 = vpack.c.bf16 %v412_v56, %v411_v55  ;;  %v413_v63 = vld [vmem:[#allocation5 + $0x40] sm:$0xff]  ;;  %v2458_v1 = vpack.c.bf16 %v1087_v59, %v1086_v58  ;;  %v3087_v2 = vld [vmem:[%s3048_s12 + $0x38] sm:$0xff]  ;;  %v317_v43 = vrot.slane %v3082_v61, 7 }
  0x79   : > { %2353 = vmatpush3.bf16.msra.mxu0 %v2350_v12  ;;  %v414_v0 = vld [vmem:[#allocation5 + $0x48] sm:$0xff]  ;;  %v3090_v3 = vld [vmem:[%s3048_s12 + $0x40] sm:$0xff]  ;;  %v415_v5 = vld [vmem:[#allocation5 + $0x50] sm:$0xff] }
  0x7a   : > { %2355 = vmatprep.subr.bf16.mxu0 %v2354_v15  ;;  %v2386_v4 = vpack.c.bf16 %v414_v0, %v413_v63  ;;  %v416_v6 = vld [vmem:[#allocation5 + $0x58] sm:$0xff]  ;;  %v3095_v7 = vld [vmem:[%s3048_s12 + $0x48] sm:$0xff]  ;;  %v3098_v8 = vld [vmem:[%s3048_s12 + $0x50] sm:$0xff]  ;;  %v320_v51 = vrot.slane %v3090_v3, 7 }
  0x7b   : > { %2445 = vmatpush3.bf16.msra.mxu1 %v2442_v35  ;;  %v2390_v10 = vpack.c.bf16 %v416_v6, %v415_v5  ;;  %v417_v11 = vld [vmem:[#allocation5 + $0x60] sm:$0xff]  ;;  %v418_v12 = vld [vmem:[#allocation5 + $0x68] sm:$0xff]  ;;  %v3103_v13 = vld [vmem:[%s3048_s12 + $0x58] sm:$0xff]  ;;  %v323_v59 = vrot.slane %v3098_v8, 7 }
  0x7c   : > { %2447 = vmatprep.subr.bf16.mxu1 %v2446_v41  ;;  %v3106_v14 = vld [vmem:[%s3048_s12 + $0x60] sm:$0xff]  ;;  %v419_v16 = vld [vmem:[#allocation5 + $0x70] sm:$0xff]  ;;  %v420_v17 = vld [vmem:[#allocation5 + $0x78] sm:$0xff] }
  0x7d   : > { %2357 = vmatpush3.bf16.msra.mxu0 %v2354_v15  ;;  %v2394_v15 = vpack.c.bf16 %v418_v12, %v417_v11  ;;  %v3114_v19 = vld [vmem:[%s3048_s12 + $0x70] sm:$0xff]  ;;  %v2398_v20 = vpack.c.bf16 %v420_v17, %v419_v16  ;;  %v730_v22 = vld [vmem:[#allocation5 + $0x108] sm:$0xff]  ;;  %v3120_v24 = vld [vmem:[%s3048_s12 + $0x78] sm:$0xff]  ;;  %v326_v5 = vrot.slane %v3106_v14, 7 }
  0x7e   : > { %2359 = vmatprep.subr.bf16.mxu0 %v2358_v18  ;;  %vm3124_vm1 = vmneg %vm307_vm0  ;;  %v731_v28 = vld [vmem:[#allocation5 + $0x110] sm:$0xff]  ;;  %v732_v29 = vld [vmem:[#allocation5 + $0x118] sm:$0xff]  ;;  %v329_v16 = vrot.slane %v3114_v19, 7  ;;  %v330_v17 = vrot.slane %v3120_v24, 7 }
  0x7f   : > { %2449 = vmatpush3.bf16.msra.mxu1 %v2446_v41  ;;  %v2406_v33 = vpack.c.bf16 %v732_v29, %v731_v28  ;;  %v733_v34 = vld [vmem:[#allocation5 + $0x120] sm:$0xff]  ;;  %v734_v35 = vld [vmem:[#allocation5 + $0x128] sm:$0xff]  ;;  %v735_v40 = vld [vmem:[#allocation5 + $0x130] sm:$0xff]  ;;  %v361_v28 = vrot.slane %v3071_v52, 1 }
  0x80   : > { %2451 = vmatprep.subr.bf16.mxu1 %v2450_v49  ;;  %v2410_v39 = vpack.c.bf16 %v734_v35, %v733_v34  ;;  %v736_v41 = vld [vmem:[#allocation5 + $0x138] sm:$0xff]  ;;  %v737_v48 = vld [vmem:[#allocation5 + $0x140] sm:$0xff]  ;;  %v739_v56 = vld [vmem:[#allocation5 + $0x150] sm:$0xff]  ;;  %v331_v23 = vsel %vm307_vm0, %v329_v16, %v330_v17  ;;  %v367_v34 = vrot.slane %v3087_v2, 1 }
  0x81   : > { %2361 = vmatpush3.bf16.msra.mxu0 %v2358_v18  ;;  %v3111_v18 = vld [vmem:[%s3048_s12 + $0x68] sm:$0xff]  ;;  %v2414_v47 = vpack.c.bf16 %v736_v41, %v735_v40  ;;  %v741_v0 = vld [vmem:[#allocation5 + $0x160] sm:$0xff]  ;;  %v743_v11 = vld [vmem:[#allocation5 + $0x170] sm:$0xff]  ;;  %v373_v40 = vrot.slane %v3103_v13, 1 }
  0x82   : > { %2363 = vmatprep.subr.bf16.mxu0 %v2362_v21  ;;  %v327_v6 = vrot.slane %v3111_v18, 7  ;;  %v744_v12 = vld [vmem:[#allocation5 + $0x178] sm:$0xff] }
  0x83   : > { %2453 = vmatpush3.bf16.msra.mxu1 %v2450_v49  ;;  %v738_v49 = vld [vmem:[#allocation5 + $0x148] sm:$0xff] }
  0x84   : > { %2455 = vmatprep.subr.bf16.mxu1 %v2454_v57  ;;  %v2418_v55 = vpack.c.bf16 %v738_v49, %v737_v48  ;;  %v379_v48 = vrot.slane %v3120_v24, 1 }
  0x85   : > { %2365 = vmatpush3.bf16.msra.mxu0 %v2362_v21  ;;  %v729_v21 = vld [vmem:[#allocation5 + $0x100] sm:$0xff] }
  0x86   : > { %2367 = vmatprep.subr.bf16.mxu0 %v2366_v32  ;;  %v2402_v27 = vpack.c.bf16 %v730_v22, %v729_v21  ;;  %v357_v21 = vrot.slane %v3059_v9, 1  ;;  %v358_v22 = vrot.slane %v3063_v44, 1 }
  0x87   : > { %2457 = vmatpush3.bf16.msra.mxu1 %v2454_v57  ;;  %v740_v57 = vld [vmem:[#allocation5 + $0x158] sm:$0xff] }
  0x88   : > { %2459 = vmatprep.subr.bf16.mxu1 %v2458_v1  ;;  %v2422_v63 = vpack.c.bf16 %v740_v57, %v739_v56  ;;  %v1058_v56 = vld [vmem:[#allocation7 + $0x8] sm:$0xff] }
  0x89   : > { %2369 = vmatpush3.bf16.msra.mxu0 %v2366_v32  ;;  %v312_v32 = vrot.slane %v3071_v52, 7 }
  0x8a   : > { %2371 = vmatprep.subr.bf16.mxu0 %v2370_v38 }
  0x8b   : > { %2461 = vmatpush3.bf16.msra.mxu1 %v2458_v1  ;;  %v313_v36 = vsel %vm307_vm0, %v311_v31, %v312_v32  ;;  %v742_v1 = vld [vmem:[#allocation5 + $0x168] sm:$0xff] }
  0x8c   : > { %2035 = vmatmul.mubr.f32.vlgmr.msra.gmra.mrb[0].mxu0 %v3063_v44 }
  0x8d   : > { %2373 = vmatpush3.bf16.msra.mxu0 %v2370_v38  ;;  %2037 = vmatprep.mubr.f32.mxu0 %v3066_v45  ;;  %v315_v38 = vrot.slane %v3079_v60, 7 }
  0x8e   : > { %2375 = vmatprep.subr.bf16.mxu0 %v2374_v46 }
  0x8f   : > { %v316_v42 = vsel %vm307_vm0, %v314_v37, %v315_v38 }
  0x90   : > { %2038 = vmatmul.mubr.f32.gmra.mrb[2].mxu0 %v3071_v52 }
  0x91   : > { %2377 = vmatpush3.bf16.msra.mxu0 %v2374_v46  ;;  %2040 = vmatprep.mubr.f32.mxu0 %v3074_v53  ;;  %v318_v46 = vrot.slane %v3087_v2, 7 }
  0x92   : > { %2379 = vmatprep.subr.bf16.mxu0 %v2378_v54 }
  0x93   : > { %v319_v50 = vsel %vm307_vm0, %v317_v43, %v318_v46 }
  0x94   : > { %2041 = vmatmul.mubr.f32.gmra.mrb[4].mxu0 %v3079_v60 }
  0x95   : > { %2381 = vmatpush3.bf16.msra.mxu0 %v2378_v54  ;;  %2043 = vmatprep.mubr.f32.mxu0 %v3082_v61  ;;  %v321_v54 = vrot.slane %v3095_v7, 7 }
  0x96   : > { %2383 = vmatprep.subr.bf16.mxu0 %v2382_v62 }
  0x97   : > { %v322_v58 = vsel %vm307_vm0, %v320_v51, %v321_v54 }
  0x98   : > { %2044 = vmatmul.mubr.f32.gmra.mrb[6].mxu0 %v3087_v2 }
  0x99   : > { %2385 = vmatpush3.bf16.msra.mxu0 %v2382_v62  ;;  %2046 = vmatprep.mubr.f32.mxu0 %v3090_v3  ;;  %v324_v62 = vrot.slane %v3103_v13, 7 }
  0x9a   : > { %2387 = vmatprep.subr.bf16.mxu0 %v2386_v4 }
  0x9c   : > { %2047 = vmatmul.mubr.f32.gmra.mrb[8].mxu0 %v3095_v7 }
  0x9d   : > { %2389 = vmatpush3.bf16.msra.mxu0 %v2386_v4  ;;  %2049 = vmatprep.mubr.f32.mxu0 %v3098_v8  ;;  %v325_v4 = vsel %vm307_vm0, %v323_v59, %v324_v62 }
  0x9e   : > { %2391 = vmatprep.subr.bf16.mxu0 %v2390_v10 }
  0xa0   : > { %2050 = vmatmul.mubr.f32.gmra.mrb[10].mxu0 %v3103_v13 }
  0xa1   : > { %2393 = vmatpush3.bf16.msra.mxu0 %v2390_v10  ;;  %2052 = vmatprep.mubr.f32.mxu0 %v3106_v14  ;;  %v2426_v10 = vpack.c.bf16 %v742_v1, %v741_v0  ;;  %v1059_v1 = vld [vmem:[#allocation7 + $0x10] sm:$0xff] }
  0xa2   : > { %2395 = vmatprep.subr.bf16.mxu0 %v2394_v15 }
  0xa4   : > { %2053 = vmatmul.mubr.f32.gmra.mrb[12].mxu0 %v3111_v18 }
  0xa5   : > { %2397 = vmatpush3.bf16.msra.mxu0 %v2394_v15  ;;  %2055 = vmatprep.mubr.f32.mxu0 %v3114_v19  ;;  %v328_v15 = vsel %vm307_vm0, %v326_v5, %v327_v6 }
  0xa6   : > { %2399 = vmatprep.subr.bf16.mxu0 %v2398_v20 }
  0xa8   : > { %2056 = vmatmul.mubr.f32.gmra.mrb[14].mxu0 %v3120_v24 }
  0xa9   : > { %2401 = vmatpush3.bf16.msra.mxu0 %v2398_v20  ;;  %2090 = vmatprep.mubr.msk.f32.mxu0 %vm3124_vm1, %v308_v25  ;;  %v2430_v20 = vpack.c.bf16 %v744_v12, %v743_v11  ;;  %v359_v25 = vsel %vm356_vm2, %v357_v21, %v358_v22 }
  0xaa   : > { %2403 = vmatprep.subr.bf16.mxu0 %v2402_v27 }
  0xac   : > { %2091 = vmatmul.mubr.f32.vlgmr.msra.gmra.mrb[0].mxu0 %v310_v30  ;;  %v363_v30 = vrot.slane %v3074_v53, 1 }
  0xad   : > { %2405 = vmatpush3.bf16.msra.mxu0 %v2402_v27  ;;  %2093 = vmatprep.mubr.msk.f32.mxu0 %vm3124_vm1, %v311_v31  ;;  %v360_v27 = vrot.slane %v3066_v45, 1  ;;  %v364_v31 = vrot.slane %v3079_v60, 1 }
  0xae   : > { %2407 = vmatprep.subr.bf16.mxu0 %v2406_v33 }
  0xaf   : > { %v362_v29 = vsel %vm356_vm2, %v360_v27, %v361_v28  ;;  %v365_v32 = vsel %vm356_vm2, %v363_v30, %v364_v31 }
  0xb0   : > { %2094 = vmatmul.mubr.f32.gmra.mrb[2].mxu0 %v313_v36  ;;  %v369_v36 = vrot.slane %v3090_v3, 1 }
  0xb1   : > { %2409 = vmatpush3.bf16.msra.mxu0 %v2406_v33  ;;  %2096 = vmatprep.mubr.msk.f32.mxu0 %vm3124_vm1, %v314_v37  ;;  %v366_v33 = vrot.slane %v3082_v61, 1  ;;  %v370_v37 = vrot.slane %v3095_v7, 1 }
  0xb2   : > { %2411 = vmatprep.subr.bf16.mxu0 %v2410_v39 }
  0xb3   : > { %v368_v35 = vsel %vm356_vm2, %v366_v33, %v367_v34  ;;  %v371_v38 = vsel %vm356_vm2, %v369_v36, %v370_v37 }
  0xb4   : > { %2097 = vmatmul.mubr.f32.gmra.mrb[4].mxu0 %v316_v42  ;;  %v375_v42 = vrot.slane %v3106_v14, 1 }
  0xb5   : > { %2413 = vmatpush3.bf16.msra.mxu0 %v2410_v39  ;;  %2099 = vmatprep.mubr.msk.f32.mxu0 %vm3124_vm1, %v317_v43  ;;  %v372_v39 = vrot.slane %v3098_v8, 1  ;;  %v376_v43 = vrot.slane %v3111_v18, 1 }
  0xb6   : > { %2415 = vmatprep.subr.bf16.mxu0 %v2414_v47 }
  0xb7   : > { %v374_v41 = vsel %vm356_vm2, %v372_v39, %v373_v40  ;;  %v377_v46 = vsel %vm356_vm2, %v375_v42, %v376_v43 }
  0xb8   : > { %2100 = vmatmul.mubr.f32.gmra.mrb[6].mxu0 %v319_v50  ;;  %v1088_v50 = vld [vmem:[#allocation7 + $0xf0] sm:$0xff] }
  0xb9   : > { %2417 = vmatpush3.bf16.msra.mxu0 %v2414_v47  ;;  %2102 = vmatprep.mubr.msk.f32.mxu0 %vm3124_vm1, %v320_v51  ;;  %v378_v47 = vrot.slane %v3114_v19, 1  ;;  %v1089_v51 = vld [vmem:[#allocation7 + $0xf8] sm:$0xff] }
  0xba   : > { %2419 = vmatprep.subr.bf16.mxu0 %v2418_v55  ;;  %v2462_v54 = vpack.c.bf16 %v1089_v51, %v1088_v50 }
  0xbb   : > { %v380_v49 = vsel %vm356_vm2, %v378_v47, %v379_v48 }
  0xbc   : > { %2103 = vmatmul.mubr.f32.gmra.mrb[8].mxu0 %v322_v58  ;;  %2463 = vmatprep.subr.bf16.mxu1 %v2462_v54  ;;  %v3202_v58 = vld [vmem:[%s3552_s2] ss:$0 sm:$0xff] }
  0xbd   : > { %2421 = vmatpush3.bf16.msra.mxu0 %v2418_v55  ;;  %2105 = vmatprep.mubr.msk.f32.mxu0 %vm3124_vm1, %v323_v59  ;;  %v1057_v55 = vld [vmem:[#allocation7] sm:$0xff] }
  0xbe   : > { %2423 = vmatprep.subr.bf16.mxu0 %v2422_v63  ;;  %2465 = vmatpush3.bf16.msra.mxu1 %v2462_v54  ;;  %v2466_v57 = vpack.c.bf16 %v1058_v56, %v1057_v55 }
  0xc0   : > { %2106 = vmatmul.mubr.f32.gmra.mrb[10].mxu0 %v325_v4  ;;  %2467 = vmatprep.subr.bf16.mxu1 %v2466_v57  ;;  %v1060_v4 = vld [vmem:[#allocation7 + $0x18] sm:$0xff] }
  0xc1   : > { %2425 = vmatpush3.bf16.msra.mxu0 %v2422_v63  ;;  %2108 = vmatprep.mubr.msk.f32.mxu0 %vm3124_vm1, %v326_v5  ;;  %v2470_v17 = vpack.c.bf16 %v1060_v4, %v1059_v1 }
  0xc2   : > { %2427 = vmatprep.subr.bf16.mxu0 %v2426_v10 }
  0xc4   : > { %2109 = vmatmul.mubr.f32.gmra.mrb[12].mxu0 %v328_v15 }
  0xc5   : > { %2429 = vmatpush3.bf16.msra.mxu0 %v2426_v10  ;;  %2111 = vmatprep.mubr.msk.f32.mxu0 %vm3124_vm1, %v329_v16 }
  0xc6   : > { %2431 = vmatprep.subr.bf16.mxu0 %v2430_v20 }
  0xc8   : > { %2112 = vmatmul.mubr.f32.gmra.mrb[14].mxu0 %v331_v23  ;;  %v1061_v23 = vld [vmem:[#allocation7 + $0x20] sm:$0xff] }
  0xc9   : > { %2433 = vmatpush3.bf16.msra.mxu0 %v2430_v20  ;;  %2146 = vmatprep.mubr.f32.mxu0 %v359_v25  ;;  %v1062_v25 = vld [vmem:[#allocation7 + $0x28] sm:$0xff] }
  0xca   : > { %v2474_v36 = vpack.c.bf16 %v1062_v25, %v1061_v23 }
  0xcc   : > { %2147 = vmatmul.mubr.msk.f32.vlgmr.msra.gmra.mrb[0].mxu0 %vm356_vm2, %v358_v22 }
  0xcd   : > { %2149 = vmatprep.mubr.f32.mxu0 %v362_v29 }
  0xd0   : > { %2150 = vmatmul.mubr.msk.f32.gmra.mrb[2].mxu0 %vm356_vm2, %v361_v28 }
  0xd1   : > { %2152 = vmatprep.mubr.f32.mxu0 %v365_v32 }
  0xd4   : > { %2153 = vmatmul.mubr.msk.f32.gmra.mrb[4].mxu0 %vm356_vm2, %v364_v31 }
  0xd5   : > { %2155 = vmatprep.mubr.f32.mxu0 %v368_v35 }
  0xd8   : > { %2156 = vmatmul.mubr.msk.f32.gmra.mrb[6].mxu0 %vm356_vm2, %v367_v34 }
  0xd9   : > { %2158 = vmatprep.mubr.f32.mxu0 %v371_v38 }
  0xdc   : > { %2159 = vmatmul.mubr.msk.f32.gmra.mrb[8].mxu0 %vm356_vm2, %v370_v37 }
  0xdd   : > { %2161 = vmatprep.mubr.f32.mxu0 %v374_v41  ;;  %v1064_v41 = vld [vmem:[#allocation7 + $0x38] sm:$0xff] }
  0xe0   : > { %2162 = vmatmul.mubr.msk.f32.gmra.mrb[10].mxu0 %vm356_vm2, %v373_v40  ;;  %v1063_v40 = vld [vmem:[#allocation7 + $0x30] sm:$0xff] }
  0xe1   : > { %2164 = vmatprep.mubr.f32.mxu0 %v377_v46  ;;  %v2478_v55 = vpack.c.bf16 %v1064_v41, %v1063_v40 }
  0xe4   : > { %2165 = vmatmul.mubr.msk.f32.gmra.mrb[12].mxu0 %vm356_vm2, %v376_v43 }
  0xe5   : > { %2167 = vmatprep.mubr.f32.mxu0 %v380_v49 }
  0xe8   : > { %2168 = vmatmul.mubr.msk.f32.gmra.mrb[14].mxu0 %vm356_vm2, %v379_v48 }
 0x19f   : > { %v2148_v59 = vpop.f32.mrb[0].mxu0 }
 0x1a0   : > { %v914_v62 = vadd.f32 %v2148_v59, %v3202_v58  ;;  %v811_v63 = vpop.f32.mrb[1].mxu0 }
 0x1a1   : > { %v913_v0 = vadd.f32 %v3202_v58, %v811_v63  ;;  %v1066_v63 = vld [vmem:[#allocation7 + $0x48] sm:$0xff] }
 0x1a2   : > { %v3206_v5 = vmax.f32 %v914_v62, 0.0  ;;  %v1065_v62 = vld [vmem:[#allocation7 + $0x40] sm:$0xff] }
 0x1a3   : > { %v3208_v6 = vmax.f32 %v913_v0, 0.0  ;;  %v2151_v10 = vpop.f32.mrb[2].mxu0 }
 0x1a4   : > { %v962_v11 = vrot.slane %v3206_v5, 7  ;;  %v3563_v12 = vrot.slane %v3206_v5, 1  ;;  %v916_v15 = vadd.f32 %v2151_v10, %v3202_v58  ;;  %v821_v16 = vpop.f32.mrb[3].mxu0 }
 0x1a5   : > { %v961_v20 = vrot.slane %v3208_v6, 7  ;;  %v1009_v21 = vrot.slane %v3208_v6, 1  ;;  %v915_v22 = vadd.f32 %v3202_v58, %v821_v16  ;;  %2202 = vmatprep.mubr.f32.mxu1 %v3208_v6 }
 0x1a6   : > { %v3217_v27 = vmax.f32 %v916_v15, 0.0  ;;  %2203 = vmatmul.mubr.f32.vlgmr.msra.gmra.mrb[0].mxu1 %v3206_v5 }
 0x1a7   : > { %v3220_v28 = vmax.f32 %v915_v22, 0.0  ;;  %v2154_v29 = vpop.f32.mrb[4].mxu0  ;;  %2469 = vmatpush3.bf16.msra.mxu1 %v2466_v57  ;;  %v3225_v30 = vsel %vm307_vm0, %v961_v20, %v962_v11  ;;  %v3230_v31 = vsel %vm356_vm2, %v1009_v21, %v3563_v12  ;;  %v2482_v22 = vpack.c.bf16 %v1066_v63, %v1065_v62  ;;  %v1069_v62 = vld [vmem:[#allocation7 + $0x60] sm:$0xff]  ;;  %v1070_v63 = vld [vmem:[#allocation7 + $0x68] sm:$0xff] }
 0x1a8   : > { %v965_v32 = vrot.slane %v3217_v27, 7  ;;  %v3562_v33 = vrot.slane %v3217_v27, 1  ;;  %v918_v34 = vadd.f32 %v2154_v29, %v3202_v58  ;;  %v831_v35 = vpop.f32.mrb[5].mxu0  ;;  %2471 = vmatprep.subr.bf16.mxu1 %v2470_v17 }
 0x1a9   : > { %v964_v37 = vrot.slane %v3220_v28, 7  ;;  %v1012_v38 = vrot.slane %v3220_v28, 1  ;;  %v917_v39 = vadd.f32 %v3202_v58, %v831_v35  ;;  %2205 = vmatprep.mubr.f32.mxu1 %v3220_v28  ;;  %v1390_v28 = vld [vmem:[#allocation7 + $0x148] sm:$0xff] }
 0x1aa   : > { %v3239_v42 = vmax.f32 %v918_v34, 0.0  ;;  %2206 = vmatmul.mubr.f32.gmra.mrb[2].mxu1 %v3217_v27  ;;  %v1068_v34 = vld [vmem:[#allocation7 + $0x58] sm:$0xff] }
 0x1ab   : > { %v3242_v43 = vmax.f32 %v917_v39, 0.0  ;;  %v2157_v46 = vpop.f32.mrb[6].mxu0  ;;  %2473 = vmatpush3.bf16.msra.mxu1 %v2470_v17  ;;  %v3247_v47 = vsel %vm307_vm0, %v964_v37, %v965_v32  ;;  %v3252_v48 = vsel %vm356_vm2, %v1012_v38, %v3562_v33  ;;  %v1067_v32 = vld [vmem:[#allocation7 + $0x50] sm:$0xff] }
 0x1ac   : > { %v968_v49 = vrot.slane %v3239_v42, 7  ;;  %v3561_v50 = vrot.slane %v3239_v42, 1  ;;  %v920_v51 = vadd.f32 %v2157_v46, %v3202_v58  ;;  %v841_v54 = vpop.f32.mrb[7].mxu0  ;;  %2475 = vmatprep.subr.bf16.mxu1 %v2474_v36  ;;  %v3585_v26 = vrot.slane %v3239_v42, 1 }
 0x1ad   : > { %v967_v56 = vrot.slane %v3242_v43, 7  ;;  %v1015_v57 = vrot.slane %v3242_v43, 1  ;;  %v919_v59 = vadd.f32 %v3202_v58, %v841_v54  ;;  %2208 = vmatprep.mubr.f32.mxu1 %v3242_v43  ;;  %v2486_v54 = vpack.c.bf16 %v1068_v34, %v1067_v32  ;;  %v1392_v43 = vld [vmem:[#allocation7 + $0x158] sm:$0xff] }
 0x1ae   : > { %v3261_v0 = vmax.f32 %v920_v51, 0.0  ;;  %2209 = vmatmul.mubr.f32.gmra.mrb[4].mxu1 %v3239_v42  ;;  %v3445_v42 = vld [vmem:[%s3554_s4] ss:$0 sm:$0xff] }
 0x1af   : > { %v3264_v1 = vmax.f32 %v919_v59, 0.0  ;;  %v2160_v4 = vpop.f32.mrb[8].mxu0  ;;  %2477 = vmatpush3.bf16.msra.mxu1 %v2474_v36  ;;  %v3269_v10 = vsel %vm307_vm0, %v967_v56, %v968_v49  ;;  %v3274_v11 = vsel %vm356_vm2, %v1015_v57, %v3561_v50 }
 0x1b0   : > { %v971_v15 = vrot.slane %v3261_v0, 7  ;;  %v3560_v16 = vrot.slane %v3261_v0, 1  ;;  %v922_v17 = vadd.f32 %v2160_v4, %v3202_v58  ;;  %v851_v21 = vpop.f32.mrb[9].mxu0  ;;  %2479 = vmatprep.subr.bf16.mxu1 %v2478_v55 }
 0x1b1   : > { %v3567_v23 = vrot.slane %v3264_v1, 7  ;;  %v1018_v25 = vrot.slane %v3264_v1, 1  ;;  %v921_v29 = vadd.f32 %v3202_v58, %v851_v21  ;;  %2211 = vmatprep.mubr.f32.mxu1 %v3264_v1 }
 0x1b2   : > { %v3283_v35 = vmax.f32 %v922_v17, 0.0  ;;  %2212 = vmatmul.mubr.f32.gmra.mrb[6].mxu1 %v3261_v0 }
 0x1b3   : > { %v3286_v36 = vmax.f32 %v921_v29, 0.0  ;;  %v2163_v38 = vpop.f32.mrb[10].mxu0  ;;  %2481 = vmatpush3.bf16.msra.mxu1 %v2478_v55  ;;  %v3291_v39 = vsel %vm307_vm0, %v3567_v23, %v971_v15  ;;  %v3296_v40 = vsel %vm356_vm2, %v1018_v25, %v3560_v16  ;;  %v1384_v23 = vld [vmem:[#allocation7 + $0x118] sm:$0xff] }
 0x1b4   : > { %v974_v41 = vrot.slane %v3283_v35, 7  ;;  %v3559_v46 = vrot.slane %v3283_v35, 1  ;;  %v924_v49 = vadd.f32 %v2163_v38, %v3202_v58  ;;  %v861_v51 = vpop.f32.mrb[11].mxu0  ;;  %2483 = vmatprep.subr.bf16.mxu1 %v2482_v22 }
 0x1b5   : > { %v3566_v55 = vrot.slane %v3286_v36, 7  ;;  %v1021_v57 = vrot.slane %v3286_v36, 1  ;;  %v923_v59 = vadd.f32 %v3202_v58, %v861_v51  ;;  %2214 = vmatprep.mubr.f32.mxu1 %v3286_v36 }
 0x1b6   : > { %v3305_v4 = vmax.f32 %v924_v49, 0.0  ;;  %2215 = vmatmul.mubr.f32.gmra.mrb[8].mxu1 %v3283_v35  ;;  %v2490_v49 = vpack.c.bf16 %v1070_v63, %v1069_v62 }
 0x1b7   : > { %v3308_v15 = vmax.f32 %v923_v59, 0.0  ;;  %v2166_v17 = vpop.f32.mrb[12].mxu0  ;;  %2485 = vmatpush3.bf16.msra.mxu1 %v2482_v22  ;;  %v3313_v21 = vsel %vm307_vm0, %v3566_v55, %v974_v41  ;;  %v3318_v25 = vsel %vm356_vm2, %v1021_v57, %v3559_v46  ;;  %v1071_v59 = vld [vmem:[#allocation7 + $0x70] sm:$0xff]  ;;  %v1072_v57 = vld [vmem:[#allocation7 + $0x78] sm:$0xff] }
 0x1b8   : > { %v977_v29 = vrot.slane %v3305_v4, 7  ;;  %v3565_v32 = vrot.slane %v3305_v4, 1  ;;  %v926_v34 = vadd.f32 %v2166_v17, %v3202_v58  ;;  %v871_v38 = vpop.f32.mrb[13].mxu0  ;;  %2487 = vmatprep.subr.bf16.mxu1 %v2486_v54  ;;  %v2494_v33 = vpack.c.bf16 %v1072_v57, %v1071_v59 }
 0x1b9   : > { %v3564_v22 = vrot.slane %v3308_v15, 7  ;;  %v1024_v51 = vrot.slane %v3308_v15, 1  ;;  %v925_v41 = vadd.f32 %v3202_v58, %v871_v38  ;;  %2217 = vmatprep.mubr.f32.mxu1 %v3308_v15 }
 0x1ba   : > { %v3327_v46 = vmax.f32 %v926_v34, 0.0  ;;  %2218 = vmatmul.mubr.f32.gmra.mrb[10].mxu1 %v3305_v4 }
 0x1bb   : > { %v3330_v16 = vmax.f32 %v925_v41, 0.0  ;;  %v2169_v17 = vpop.f32.mrb[14].mxu0  ;;  %2489 = vmatpush3.bf16.msra.mxu1 %v2486_v54  ;;  %v3335_v62 = vsel %vm307_vm0, %v3564_v22, %v977_v29  ;;  %v3340_v63 = vsel %vm356_vm2, %v1024_v51, %v3565_v32  ;;  %v1381_v22 = vld [vmem:[#allocation7 + $0x100] sm:$0xff]  ;;  %v1382_v51 = vld [vmem:[#allocation7 + $0x108] sm:$0xff] }
 0x1bc   : > { %v980_v38 = vrot.slane %v3327_v46, 7  ;;  %v1028_v34 = vrot.slane %v3327_v46, 1  ;;  %v928_v50 = vadd.f32 %v2169_v17, %v3202_v58  ;;  %v881_v41 = vpop.f32.mrb[15].mxu0  ;;  %2491 = vmatprep.subr.bf16.mxu1 %v2490_v49 }
 0x1bd   : > { %v979_v54 = vrot.slane %v3330_v16, 7  ;;  %v1027_v12 = vrot.slane %v3330_v16, 1  ;;  %v927_v29 = vadd.f32 %v3202_v58, %v881_v41  ;;  %2220 = vmatprep.mubr.f32.mxu1 %v3330_v16  ;;  %v3584_v16 = vrot.slane %v3217_v27, 1 }
 0x1be   : > { %v3349_v32 = vmax.f32 %v928_v50, 0.0  ;;  %2221 = vmatmul.mubr.f32.gmra.mrb[12].mxu1 %v3327_v46  ;;  %v2498_v50 = vpack.c.bf16 %v1382_v51, %v1381_v22  ;;  %v1386_v51 = vld [vmem:[#allocation7 + $0x128] sm:$0xff]  ;;  %v3588_v27 = vrot.slane %v3305_v4, 1 }
 0x1bf   : > { %v3352_v55 = vmax.f32 %v927_v29, 0.0  ;;  %2493 = vmatpush3.bf16.msra.mxu1 %v2490_v49  ;;  %v981_v59 = vsel %vm307_vm0, %v979_v54, %v980_v38  ;;  %v3360_v57 = vsel %vm356_vm2, %v1027_v12, %v1028_v34  ;;  %v1383_v49 = vld [vmem:[#allocation7 + $0x110] sm:$0xff] }
 0x1c0   : > { %v983_v58 = vrot.slane %v3349_v32, 7  ;;  %v1031_v17 = vrot.slane %v3349_v32, 1  ;;  %2495 = vmatprep.subr.bf16.mxu1 %v2494_v33  ;;  %v2502_v38 = vpack.c.bf16 %v1384_v23, %v1383_v49  ;;  %v1389_v23 = vld [vmem:[#allocation7 + $0x140] sm:$0xff]  ;;  %v1395_v49 = vld [vmem:[#allocation7 + $0x170] sm:$0xff] }
 0x1c1   : > { %v982_v41 = vrot.slane %v3352_v55, 7  ;;  %v1030_v29 = vrot.slane %v3352_v55, 1  ;;  %2223 = vmatprep.mubr.f32.mxu1 %v3352_v55  ;;  %v1385_v55 = vld [vmem:[#allocation7 + $0x120] sm:$0xff] }
 0x1c2   : > { %2224 = vmatmul.mubr.f32.gmra.mrb[14].mxu1 %v3349_v32  ;;  %v2506_v6 = vpack.c.bf16 %v1386_v51, %v1385_v55 }
 0x1c3   : > { %2497 = vmatpush3.bf16.msra.mxu1 %v2494_v33  ;;  %2258 = vmatprep.mubr.msk.f32.mxu1 %vm3124_vm1, %v961_v20  ;;  %v984_v12 = vsel %vm307_vm0, %v982_v41, %v983_v58  ;;  %v3376_v22 = vsel %vm356_vm2, %v1030_v29, %v1031_v17  ;;  %v1387_v20 = vld [vmem:[#allocation7 + $0x130] sm:$0xff]  ;;  %v1388_v33 = vld [vmem:[#allocation7 + $0x138] sm:$0xff]  ;;  %v3582_v29 = vrot.slane %v3308_v15, 7  ;;  %v3583_v15 = vrot.slane %v3206_v5, 1 }
 0x1c4   : > { %2499 = vmatprep.subr.bf16.mxu1 %v2498_v50  ;;  %v1391_v58 = vld [vmem:[#allocation7 + $0x150] sm:$0xff]  ;;  %v3587_v5 = vrot.slane %v3283_v35, 1 }
 0x1c6   : > { %2259 = vmatmul.mubr.f32.vlgmr.msra.gmra.mrb[0].mxu1 %v3225_v30  ;;  %v2510_v30 = vpack.c.bf16 %v1388_v33, %v1387_v20 }
 0x1c7   : > { %2261 = vmatprep.mubr.msk.f32.mxu1 %vm3124_vm1, %v964_v37  ;;  %2501 = vmatpush3.bf16.msra.mxu1 %v2498_v50  ;;  %v3580_v37 = vrot.slane %v3264_v1, 7  ;;  %v1393_v50 = vld [vmem:[#allocation7 + $0x160] sm:$0xff]  ;;  %v1394_v1 = vld [vmem:[#allocation7 + $0x168] sm:$0xff] }
 0x1c8   : > { %2503 = vmatprep.subr.bf16.mxu1 %v2502_v38 }
 0x1ca   : > { %2262 = vmatmul.mubr.f32.gmra.mrb[2].mxu1 %v3247_v47  ;;  %v2514_v47 = vpack.c.bf16 %v1390_v28, %v1389_v23 }
 0x1cb   : > { %2264 = vmatprep.mubr.msk.f32.mxu1 %vm3124_vm1, %v967_v56  ;;  %2505 = vmatpush3.bf16.msra.mxu1 %v2502_v38  ;;  %v3581_v56 = vrot.slane %v3286_v36, 7  ;;  %v1396_v36 = vld [vmem:[#allocation7 + $0x178] sm:$0xff] }
 0x1cc   : > { %2507 = vmatprep.subr.bf16.mxu1 %v2506_v6 }
 0x1ce   : > { %2265 = vmatmul.mubr.f32.gmra.mrb[4].mxu1 %v3269_v10  ;;  %v2518_v10 = vpack.c.bf16 %v1392_v43, %v1391_v58 }
 0x1cf   : > { %2267 = vmatprep.mubr.msk.f32.mxu1 %vm3124_vm1, %v3580_v37  ;;  %2509 = vmatpush3.bf16.msra.mxu1 %v2506_v6 }
 0x1d0   : > { %2511 = vmatprep.subr.bf16.mxu1 %v2510_v30 }
 0x1d2   : > { %2268 = vmatmul.mubr.f32.gmra.mrb[6].mxu1 %v3291_v39  ;;  %v2522_v39 = vpack.c.bf16 %v1394_v1, %v1393_v50 }
 0x1d3   : > { %2270 = vmatprep.mubr.msk.f32.mxu1 %vm3124_vm1, %v3581_v56  ;;  %2513 = vmatpush3.bf16.msra.mxu1 %v2510_v30 }
 0x1d4   : > { %2515 = vmatprep.subr.bf16.mxu1 %v2514_v47 }
 0x1d6   : > { %2271 = vmatmul.mubr.f32.gmra.mrb[8].mxu1 %v3313_v21  ;;  %v2526_v21 = vpack.c.bf16 %v1396_v36, %v1395_v49 }
 0x1d7   : > { %2273 = vmatprep.mubr.msk.f32.mxu1 %vm3124_vm1, %v3582_v29  ;;  %2517 = vmatpush3.bf16.msra.mxu1 %v2514_v47 }
 0x1d8   : > { %2519 = vmatprep.subr.bf16.mxu1 %v2518_v10 }
 0x1da   : > { %2274 = vmatmul.mubr.f32.gmra.mrb[10].mxu1 %v3335_v62 }
 0x1db   : > { %2276 = vmatprep.mubr.msk.f32.mxu1 %vm3124_vm1, %v979_v54  ;;  %2521 = vmatpush3.bf16.msra.mxu1 %v2518_v10 }
 0x1dc   : > { %2523 = vmatprep.subr.bf16.mxu1 %v2522_v39 }
 0x1de   : > { %2277 = vmatmul.mubr.f32.gmra.mrb[12].mxu1 %v981_v59 }
 0x1df   : > { %2279 = vmatprep.mubr.msk.f32.mxu1 %vm3124_vm1, %v982_v41  ;;  %2525 = vmatpush3.bf16.msra.mxu1 %v2522_v39 }
 0x1e0   : > { %2527 = vmatprep.subr.bf16.mxu1 %v2526_v21 }
 0x1e2   : > { %2280 = vmatmul.mubr.f32.gmra.mrb[14].mxu1 %v984_v12 }
 0x1e3   : > { %2529 = vmatpush3.bf16.msra.mxu1 %v2526_v21  ;;  %2314 = vmatprep.mubr.f32.mxu1 %v3230_v31  ;;  %v3586_v31 = vrot.slane %v3261_v0, 1 }
 0x1e6   : > { %2315 = vmatmul.mubr.msk.f32.vlgmr.msra.gmra.mrb[0].mxu1 %vm356_vm2, %v3583_v15 }
 0x1e7   : > { %2317 = vmatprep.mubr.f32.mxu1 %v3252_v48 }
 0x1ea   : > { %2318 = vmatmul.mubr.msk.f32.gmra.mrb[2].mxu1 %vm356_vm2, %v3584_v16 }
 0x1eb   : > { %2320 = vmatprep.mubr.f32.mxu1 %v3274_v11 }
 0x1ee   : > { %2321 = vmatmul.mubr.msk.f32.gmra.mrb[4].mxu1 %vm356_vm2, %v3585_v26 }
 0x1ef   : > { %2323 = vmatprep.mubr.f32.mxu1 %v3296_v40 }
 0x1f2   : > { %2324 = vmatmul.mubr.msk.f32.gmra.mrb[6].mxu1 %vm356_vm2, %v3586_v31 }
 0x1f3   : > { %2326 = vmatprep.mubr.f32.mxu1 %v3318_v25 }
 0x1f6   : > { %2327 = vmatmul.mubr.msk.f32.gmra.mrb[8].mxu1 %vm356_vm2, %v3587_v5 }
 0x1f7   : > { %2329 = vmatprep.mubr.f32.mxu1 %v3340_v63 }
 0x1fa   : > { %2330 = vmatmul.mubr.msk.f32.gmra.mrb[10].mxu1 %vm356_vm2, %v3588_v27 }
 0x1fb   : > { %2332 = vmatprep.mubr.f32.mxu1 %v3360_v57 }
 0x1fe   : > { %2333 = vmatmul.mubr.msk.f32.gmra.mrb[12].mxu1 %vm356_vm2, %v1028_v34 }
 0x1ff   : > { %2335 = vmatprep.mubr.f32.mxu1 %v3376_v22 }
 0x202   : > { %2336 = vmatmul.mubr.msk.f32.gmra.mrb[14].mxu1 %vm356_vm2, %v1031_v17 }
 0x2b9   : > { %v2316_v48 = vpop.f32.mrb[0].mxu1 }
 0x2ba   : > { %v1566_v0 = vadd.f32 %v2316_v48, %v3445_v42  ;;  %v1463_v11 = vpop.f32.mrb[1].mxu1 }
 0x2bb   : > { %v1565_v35 = vadd.f32 %v3445_v42, %v1463_v11 }
 0x2bc   : > { %v1582_v40 = vadd.f32 %v1566_v0, %v3063_v44 }
 0x2bd   : > { %v1581_v46 = vadd.f32 %v1565_v35, %v3059_v9  ;;  %v2319_v4 = vpop.f32.mrb[2].mxu1 }
 0x2be   : > { %v1598_v25 = vmax.f32 %v1582_v40, 0.0  ;;  %v1568_v32 = vadd.f32 %v2319_v4, %v3445_v42  ;;  %v1473_v62 = vpop.f32.mrb[3].mxu1 }
 0x2bf   : > { %v1597_v63 = vmax.f32 %v1581_v46, 0.0  ;;  %v1567_v34 = vadd.f32 %v3445_v42, %v1473_v62 }
 0x2c0   : > { %1614 = vst [vmem:[%s3455_s10 + $0x8] sm:$0xff] %v1598_v25  ;;  %v1584_v44 = vadd.f32 %v1568_v32, %v3071_v52 }
 0x2c1   : > { %1613 = vst [vmem:[%s3455_s10] sm:$0xff] %v1597_v63  ;;  %v1583_v9 = vadd.f32 %v1567_v34, %v3066_v45  ;;  %v2322_v54 = vpop.f32.mrb[4].mxu1 }
 0x2c2   : > { %v1600_v59 = vmax.f32 %v1584_v44, 0.0  ;;  %v1570_v57 = vadd.f32 %v2322_v54, %v3445_v42  ;;  %v1483_v17 = vpop.f32.mrb[5].mxu1 }
 0x2c3   : > { %v1599_v41 = vmax.f32 %v1583_v9, 0.0  ;;  %v1569_v12 = vadd.f32 %v3445_v42, %v1483_v17 }
 0x2c4   : > { %1616 = vst [vmem:[%s3455_s10 + $0x18] sm:$0xff] %v1600_v59  ;;  %v1586_v22 = vadd.f32 %v1570_v57, %v3079_v60 }
 0x2c5   : > { %1615 = vst [vmem:[%s3455_s10 + $0x10] sm:$0xff] %v1599_v41  ;;  %v1585_v38 = vadd.f32 %v1569_v12, %v3074_v53  ;;  %v2325_v52 = vpop.f32.mrb[6].mxu1 }
 0x2c6   : > { %v1602_v55 = vmax.f32 %v1586_v22, 0.0  ;;  %v1572_v45 = vadd.f32 %v2325_v52, %v3445_v42  ;;  %v1493_v51 = vpop.f32.mrb[7].mxu1 }
 0x2c7   : > { %v1601_v6 = vmax.f32 %v1585_v38, 0.0  ;;  %v1571_v20 = vadd.f32 %v3445_v42, %v1493_v51 }
 0x2c8   : > { %1618 = vst [vmem:[%s3455_s10 + $0x28] sm:$0xff] %v1602_v55  ;;  %v1588_v33 = vadd.f32 %v1572_v45, %v3087_v2 }
 0x2c9   : > { %1617 = vst [vmem:[%s3455_s10 + $0x20] sm:$0xff] %v1601_v6  ;;  %v1587_v30 = vadd.f32 %v1571_v20, %v3082_v61  ;;  %v2328_v60 = vpop.f32.mrb[8].mxu1 }
 0x2ca   : > { %v1604_v23 = vmax.f32 %v1588_v33, 0.0  ;;  %v1574_v53 = vadd.f32 %v2328_v60, %v3445_v42  ;;  %v1503_v28 = vpop.f32.mrb[9].mxu1 }
 0x2cb   : > { %v1603_v37 = vmax.f32 %v1587_v30, 0.0  ;;  %v1573_v47 = vadd.f32 %v3445_v42, %v1503_v28 }
 0x2cc   : > { %1620 = vst [vmem:[%s3455_s10 + $0x38] sm:$0xff] %v1604_v23  ;;  %v1590_v58 = vadd.f32 %v1574_v53, %v3095_v7 }
 0x2cd   : > { %1619 = vst [vmem:[%s3455_s10 + $0x30] sm:$0xff] %v1603_v37  ;;  %v1589_v43 = vadd.f32 %v1573_v47, %v3090_v3  ;;  %v2331_v2 = vpop.f32.mrb[10].mxu1 }
 0x2ce   : > { %v1606_v56 = vmax.f32 %v1590_v58, 0.0  ;;  %v1576_v61 = vadd.f32 %v2331_v2, %v3445_v42  ;;  %v1513_v10 = vpop.f32.mrb[11].mxu1 }
 0x2cf   : > { %v1605_v50 = vmax.f32 %v1589_v43, 0.0  ;;  %v1575_v1 = vadd.f32 %v3445_v42, %v1513_v10 }
 0x2d0   : > { %1622 = vst [vmem:[%s3455_s10 + $0x48] sm:$0xff] %v1606_v56  ;;  %v1592_v29 = vadd.f32 %v1576_v61, %v3103_v13 }
 0x2d1   : > { %1621 = vst [vmem:[%s3455_s10 + $0x40] sm:$0xff] %v1605_v50  ;;  %v1591_v39 = vadd.f32 %v1575_v1, %v3098_v8  ;;  %v2334_v7 = vpop.f32.mrb[12].mxu1 }
 0x2d2   : > { %v1608_v49 = vmax.f32 %v1592_v29, 0.0  ;;  %v1578_v3 = vadd.f32 %v2334_v7, %v3445_v42  ;;  %v1523_v36 = vpop.f32.mrb[13].mxu1 }
 0x2d3   : > { %v1607_v21 = vmax.f32 %v1591_v39, 0.0  ;;  %v1577_v15 = vadd.f32 %v3445_v42, %v1523_v36 }
 0x2d4   : > { %1624 = vst [vmem:[%s3455_s10 + $0x58] sm:$0xff] %v1608_v49  ;;  %v1594_v16 = vadd.f32 %v1578_v3, %v3111_v18 }
 0x2d5   : > { %1623 = vst [vmem:[%s3455_s10 + $0x50] sm:$0xff] %v1607_v21  ;;  %v1593_v13 = vadd.f32 %v1577_v15, %v3106_v14  ;;  %v2337_v26 = vpop.f32.mrb[14].mxu1 }
 0x2d6   : > { %v1610_v8 = vmax.f32 %v1594_v16, 0.0  ;;  %v1580_v31 = vadd.f32 %v2337_v26, %v3445_v42  ;;  %v1533_v5 = vpop.f32.mrb[15].mxu1 }
 0x2d7   : > { %v1609_v27 = vmax.f32 %v1593_v13, 0.0  ;;  %v1579_v48 = vadd.f32 %v3445_v42, %v1533_v5 }
 0x2d8   : > { %1626 = vst [vmem:[%s3455_s10 + $0x68] sm:$0xff] %v1610_v8  ;;  %v1596_v18 = vadd.f32 %v1580_v31, %v3120_v24 }
 0x2d9   : > { %1625 = vst [vmem:[%s3455_s10 + $0x60] sm:$0xff] %v1609_v27  ;;  %v1595_v14 = vadd.f32 %v1579_v48, %v3114_v19 }
 0x2da   : > { %v1612_v0 = vmax.f32 %v1596_v18, 0.0 }
 0x2db   : > { %v1611_v42 = vmax.f32 %v1595_v14, 0.0 }
 0x2dc   : > { %1628 = vst [vmem:[%s3455_s10 + $0x78] sm:$0xff] %v1612_v0 }
 0x2dd   : > { %1627 = vst [vmem:[%s3455_s10 + $0x70] sm:$0xff] %v1611_v42 }
 0x2de   : > { %2764 = shalt.err (!%p2761_p1)
}
 0x2df   : > { %s2765_s12 = scalar_lea.hbm %s3502_s11, 2048  ;;  %s2769_s15 = scalar_lea.hbm %s3555_s5, 4096 }
 0x2e0   : > { %p2766_p13 = scmp.ne.s32.totalorder %s3502_s11, %s2765_s12  ;;  %p2770_p4 = scmp.lt.u32.totalorder %s3502_s11, %s3555_s5 }
 0x2e1   : > { %p2771_p5 = scmp.lt.u32.totalorder %s2769_s15, %s2765_s12  ;;  %p2773_p11 = scmp.lt.u32.totalorder %s2765_s12, %s3502_s11 }
 0x2e2   : > { %p2767_p6 = pnand %p2766_p13, %p3589_p0 }
 0x2e3   : > { %p2772_p8 = por %p2771_p5, %p2770_p4 }
 0x2e4   : > { %p2768_p10 = pneg %p2767_p6 }
 0x2e5   : > { %p2774_p2 = por %p2773_p11, %p2772_p8 }
 0x2e7   : > { %p2775_p3 = pnand %p2774_p2, %p2768_p10 }
 0x2e9   : > { %2778 = shalt.err (!%p2775_p3)
}
 0x2ea   : > { %s2829_s28 = smov 128   ;;  %s2830_s9 = smov 8  }
 0x2eb   : > { %2604 = dma.vmem_to_hbm [thread:$0]  (%p3589_p0), %s3504_s13, 2048, %s3502_s11, %s1630_s22, %s2829_s28, %s2829_s28, %s2830_s9  }
 0x2ec PF: > { %s1659_s30 = sand.u32 1, %s2809_s18   ;;  %p3590_p7 = scmp.ne.s32.totalorder %s3569_s25, 0 }
 0x2ed   : > { %p3591_p9 = scmp.ge.s32.totalorder %s2821_s21, 2  ;;  %s1660_s17 = scalar_lea.sflag [#allocation4], %s1659_s30 }
 0x2ef   : > { %p2618_p12 = pnand %p3591_p9, %p3590_p7 }
 0x2f1   : > { %2804 = dma.done.wait (!%p2618_p12), %s1660_s17, 2048  }
 0x2f2   : > { %2806 = vsyncadd (!%p2618_p12), %s1660_s17, 4294965248  ;;  %p19_p1 = scmp.ge.s32.totalorder %s2977_s29, 4   ;;  %s3592_s18 = smov %s2813_s19 }
 0x2f3   : > { %s3593_s19 = smov %s2817_s20  ;;  %s3594_s20 = smov %s2993_s27 }
 0x2f4   : > { %s3595_s21 = smov %s2977_s29  ;;  %21 = sbr.rel (!%p19_p1) target bundleno = 6 (0x6), region = 97 }
 0x2fb   :  { %1665 = vsyncpa [#allocation3], 1 }
 0x2fc   :  { %1667 = vsyncpa [#allocation3 + $0x1], 1 }
 0x2fd   :  { %1668 = vsyncpa [#allocation6], 1 }
 0x2fe   :  { %1669 = vsyncpa [#allocation4], 1 }
 0x2ff   :  { %1671 = vsyncpa [#allocation4 + $0x1], 1 }

// kernel: tpu_custom_call.1
= control target key start
LH: loop header
LB: loop body
LE: loop exit
PB: predicated region body
PF: predicated region fallthrough
CT: control target
= control target key end

     0   :  { %10 = vsyncpa [#allocation3], 0  ;;  %s3550_s0 = inlined_call_operand.hbm [shape: f32[16,16,128], index: 0, kind: input, shape index: {}]   ;;  %s3551_s1 = inlined_call_operand.hbm [shape: f32[3,128,128], index: 1, kind: input, shape index: {}]   ;;  %s3552_s2 = inlined_call_operand.vmem [shape: f32[1,128], index: 2, kind: input, shape index: {}]   ;;  %s3553_s3 = inlined_call_operand.hbm [shape: f32[3,128,128], index: 3, kind: input, shape index: {}]   ;;  %s3554_s4 = inlined_call_operand.vmem [shape: f32[1,128], index: 4, kind: input, shape index: {}]   ;;  %s3555_s5 = inlined_call_operand.hbm [shape: f32[16,16,128], index: 5, kind: output, shape index: {}]  }
   0x1   :  { %12 = vsyncpa [#allocation3 + $0x1], 0 }
   0x2   :  { %13 = vsyncpa [#allocation6], 0 }
   0x3   :  { %14 = vsyncpa [#allocation4], 0 }
   0x4   :  { %16 = vsyncpa [#allocation4 + $0x1], 0  ;;  %s2861_s18 = smov 0   ;;  %s2863_s19 = smov 0  }
   0x5   :  { %s2865_s20 = smov 0   ;;  %s2867_s21 = smov 0  }
   0x6 LB: > { %s2882_s22 = sadd.s32 4294967295, %s2821_s21   ;;  %s1736_s23 = sadd.s32 4294967294, %s2821_s21   ;;  %s2821_s21 = sphi %s2867_s21, %s3595_s21   ;;  %s2817_s20 = sphi %s2865_s20, %s3594_s20   ;;  %s2813_s19 = sphi %s2863_s19, %s3593_s19   ;;  %s2809_s18 = sphi %s2861_s18, %s3592_s18  }
   0x7   : > { %p42_p0 = scmp.ne.s32.totalorder %s2813_s19, %s2809_s18  ;;  %p3556_p1 = scmp.eq.s32.totalorder %s2882_s22, 0 }
   0x8   : > { %p156_p3 = scmp.eq.s32.totalorder %s1736_s23, 1  ;;  %p1737_p5 = scmp.ge.s32.totalorder %s2821_s21, 1 }
   0x9   : > { %p2891_p4 = por %p3556_p1, %p42_p0  ;;  %p163_p7 = scmp.lt.s32.totalorder %s2821_s21, 3 }
   0xa   : > { %p2896_p6 = por %p156_p3, %p42_p0  ;;  %s2823_s27 = smov [#allocation5]  }
   0xb   : > { %s3568_s24 = scalar_select %p2891_p4, 1, 0 }
   0xc   : > { %s3569_s25 = scalar_select %p2896_p6, 1, 0 }
   0xd   : > { %p2901_p8 = pnand %p1737_p5, %p163_p7  ;;  %s175_s28 = sshll.u32 %s2823_s27, 4  ;;  %s2905_s28 = int_to_ptr.vmem [resolvable:$true] %s175_s28 }
   0xe   : > { %s2824_s30 = smov [#allocation7]   ;;  %s2665_s9 = scalar_lea.hbm %s3551_s1, 6144 }
   0xf   : > { %p2606_p9 = pneg %p2901_p8  ;;  %s191_s6 = sshll.u32 %s2824_s30, 4  ;;  %s2916_s6 = int_to_ptr.vmem [resolvable:$true] %s191_s6 }
  0x10   : > { %p2666_p12 = scmp.ne.s32.totalorder %s3551_s1, %s2665_s9  ;;  %p2672_p5 = scmp.lt.u32.totalorder %s2665_s9, %s3551_s1 }
  0x11   : > { %p2912_p11 = pnand %p2606_p9, %p3556_p1 }
  0x13   : > { %p2667_p13 = pneg %p2912_p11 }
  0x15   : > { %p2668_p0 = pnand %p2667_p13, %p2666_p12 }
  0x17   : > { %p2669_p3 = pneg %p2668_p0 }
  0x19   : > { %p2674_p7 = pnand %p2672_p5, %p2669_p3 }
  0x1b   : > { %2677 = shalt.err (!%p2674_p7)
}
  0x1c   : > { %s2678_s14 = scalar_lea.vmem %s2905_s28, 6144  ;;  %p2686_p2 = scmp.lt.s32.totalorder %s2905_s28, %s2905_s28 }
  0x1d   : > { %p2679_p9 = scmp.ne.s32.totalorder %s2905_s28, %s2678_s14  ;;  %p2687_p12 = scmp.lt.s32.totalorder %s2678_s14, %s2678_s14 }
  0x1f   : > { %p2681_p10 = pnand %p2679_p9, %p2667_p13  ;;  %p2688_p0 = por %p2687_p12, %p2686_p2 }
  0x21   : > { %p2682_p1 = pneg %p2681_p10 }
  0x23   : > { %p2689_p6 = pnand %p2688_p0, %p2682_p1 }
  0x25   : > { %2692 = shalt.err (!%p2689_p6)
}
  0x26   : > { %s2825_s15 = smov 128   ;;  %s2826_s16 = smov 8  }
  0x27   : > { %2609 = dma.hbm_to_vmem [thread:$0]  (!%p2912_p11), %s3551_s1, 6144, %s2905_s28, [#allocation6], %s2825_s15, %s2825_s15, %s2826_s16  }
  0x28   : > { %s2693_s7 = scalar_lea.hbm %s3553_s3, 6144 }
  0x29   : > { %p2694_p1 = scmp.ne.s32.totalorder %s3553_s3, %s2693_s7  ;;  %p2700_p10 = scmp.lt.u32.totalorder %s2693_s7, %s3553_s3 }
  0x2b   : > { %p2696_p2 = pnand %p2694_p1, %p2667_p13 }
  0x2d   : > { %p2697_p6 = pneg %p2696_p2 }
  0x2f   : > { %p2702_p3 = pnand %p2700_p10, %p2697_p6 }
  0x31   : > { %2705 = shalt.err (!%p2702_p3)
}
  0x32   : > { %s2706_s28 = scalar_lea.vmem %s2916_s6, 6144  ;;  %p2714_p12 = scmp.lt.s32.totalorder %s2916_s6, %s2916_s6 }
  0x33   : > { %p2707_p5 = scmp.ne.s32.totalorder %s2916_s6, %s2706_s28  ;;  %p2715_p0 = scmp.lt.s32.totalorder %s2706_s28, %s2706_s28 }
  0x35   : > { %p2709_p7 = pnand %p2707_p5, %p2667_p13  ;;  %p2716_p1 = por %p2715_p0, %p2714_p12 }
  0x37   : > { %p2710_p9 = pneg %p2709_p7 }
  0x39   : > { %p2717_p2 = pnand %p2716_p1, %p2710_p9 }
  0x3b   : > { %2720 = shalt.err (!%p2717_p2)
}
  0x3c   : > { %2612 = dma.hbm_to_vmem [thread:$0]  (!%p2912_p11), %s3553_s3, 6144, %s2916_s6, [#allocation6], %s2825_s15, %s2825_s15, %s2826_s16  }
  0x3d   : > { %s2977_s29 = sadd.s32 1, %s2821_s21   ;;  %s29_s14 = sadd.s32 1, %s2817_s20 }
  0x3e   : > { %s26_s17 = ssub.s32 %s2821_s21, %s2977_s29  ;;  %p36_p13 = scmp.ne.s32.totalorder %s2817_s20, %s2813_s19 }
  0x3f   : > { %p27_p6 = scmp.eq.s32.totalorder %s26_s17, 0  ;;  %p37_p10 = scmp.eq.s32.totalorder %s2821_s21, 0 }
  0x40   : > { %p3572_p3 = scmp.eq.s32.totalorder %s2882_s22, 1  ;;  %p2623_p7 = scmp.lt.s32.totalorder %s2821_s21, 2 }
  0x41   : > { %s2993_s27 = scalar_select %p27_p6, %s2817_s20, %s29_s14  }
  0x42   : > { %p2987_p5 = por %p3572_p3, %p36_p13  ;;  %p38_p9 = por %p37_p10, %p36_p13 }
  0x43   : > { %s208_s30 = sand.u32 1, %s2817_s20   ;;  %s1807_s6 = sshll.u32 %s2821_s21, 11 }
  0x44   : > { %s3573_s23 = scalar_select %p2987_p5, 1, 0 }
  0x45   : > { %s1741_s7 = sshll.u32 %s208_s30, 7  ;;  %s3000_s10 = scalar_lea.hbm %s3550_s0, %s1807_s6 }
  0x46   : > { %s212_s11 = scalar_lea.vmem [#allocation2], %s1741_s7  ;;  %p3004_p11 = pnand %p2623_p7, %p38_p9 }
  0x47   : > { %s220_s28 = sshll.u32 %s212_s11, 4  ;;  %s3008_s13 = scalar_lea.sflag [#allocation3], %s208_s30  ;;  %s3002_s28 = int_to_ptr.vmem [resolvable:$true] %s220_s28 }
  0x48   : > { %s2721_s14 = scalar_lea.hbm %s3000_s10, 2048  ;;  %p2723_p0 = pneg %p3004_p11 }
  0x49   : > { %p2722_p12 = scmp.ne.s32.totalorder %s3000_s10, %s2721_s14  ;;  %s2726_s6 = scalar_lea.hbm %s3550_s0, 4096 }
  0x4a   : > { %p2727_p13 = scmp.lt.u32.totalorder %s3000_s10, %s3550_s0  ;;  %p2728_p6 = scmp.lt.u32.totalorder %s2726_s6, %s2721_s14 }
  0x4b   : > { %p2724_p1 = pnand %p2723_p0, %p2722_p12  ;;  %p2730_p3 = scmp.lt.u32.totalorder %s2721_s14, %s3000_s10 }
  0x4c   : > { %p2729_p10 = por %p2728_p6, %p2727_p13 }
  0x4d   : > { %p2725_p2 = pneg %p2724_p1 }
  0x4e   : > { %p2731_p7 = por %p2730_p3, %p2729_p10 }
  0x50   : > { %p2732_p9 = pnand %p2731_p7, %p2725_p2 }
  0x52   : > { %2735 = shalt.err (!%p2732_p9)
}
  0x53   : > { %s2736_s30 = scalar_lea.vmem %s3002_s28, 2048  ;;  %s2827_s11 = smov [#allocation2]  }
  0x54   : > { %p2737_p12 = scmp.ne.s32.totalorder %s3002_s28, %s2736_s30  ;;  %s2741_s17 = sshll.u32 %s2827_s11, 4  ;;  %s2742_s17 = int_to_ptr.vmem [resolvable:$false] %s2741_s17 }
  0x55   : > { %s2743_s7 = scalar_lea.vmem %s2742_s17, 4096  ;;  %p2744_p4 = scmp.lt.s32.totalorder %s3002_s28, %s2742_s17 }
  0x56   : > { %p2739_p1 = pnand %p2737_p12, %p2723_p0  ;;  %p2745_p13 = scmp.lt.s32.totalorder %s2743_s7, %s2736_s30 }
  0x58   : > { %p2740_p5 = pneg %p2739_p1  ;;  %p2746_p6 = por %p2745_p13, %p2744_p4 }
  0x5a   : > { %p2747_p10 = pnand %p2746_p6, %p2740_p5 }
  0x5c   : > { %2750 = shalt.err (!%p2747_p10)
}
  0x5d   : > { %2616 = dma.hbm_to_vmem [thread:$0]  (!%p3004_p11), %s3000_s10, 2048, %s3002_s28, %s3008_s13, %s2825_s15, %s2825_s15, %s2826_s16  }
  0x5e   : > { %232 = sbr.rel (%p2901_p8) target bundleno = 748 (0x2ec), region = 40  ;;  %s3042_s14 = sand.u32 (!%p2901_p8), 1, %s2813_s19  }
  0x5f   : > { %s1746_s6 = sshll.u32 (!%p2901_p8), %s3042_s14, 7  ;;  %s235_s8 = scalar_lea.sflag (!%p2901_p8), [#allocation3], %s3042_s14 }
  0x60   : > { %s3048_s12 = scalar_lea.vmem (!%p2901_p8), [#allocation2], %s1746_s6  ;;  %p3575_p4 = scmp.ne.s32.totalorder (!%p2901_p8), %s3568_s24, 0 }
  0x65   : > { %2796 = dma.done.wait (%p3575_p4), %s235_s8, 2048  }
  0x66   : > { %2798 = vsyncadd (%p3575_p4), %s235_s8, 4294965248  ;;  %p3576_p5 = scmp.eq.s32.totalorder %s2882_s22, 0 }
  0x68   : > { %2800 = dma.done.wait (%p3576_p5), [#allocation6], 12288   ;;  %p3577_p8 = pmov %p3576_p5 }
  0x69   : > { %v422_v0 = vld [vmem:[#allocation5 + $0x80] sm:$0xff]  ;;  %v423_v1 = vld [vmem:[#allocation5 + $0x88] sm:$0xff]  ;;  %v424_v2 = vld [vmem:[#allocation5 + $0x90] sm:$0xff]  ;;  %vm307_vm0 = vcmask 1040384   ;;  %vm356_vm2 = vcmask 1046528   ;;  %s3455_s10 = scalar_lea.vmem [#allocation8], %s1746_s6 }
  0x6a   : > { %2802 = vsyncadd (%p3577_p8), [#allocation6], 4294955008  ;;  %v2338_v3 = vpack.c.bf16 %v423_v1, %v422_v0  ;;  %v425_v4 = vld [vmem:[#allocation5 + $0x98] sm:$0xff]  ;;  %v426_v6 = vld [vmem:[#allocation5 + $0xa0] sm:$0xff]  ;;  %s1809_s28 = sshll.u32 %s2882_s22, 11  ;;  %s1644_s13 = sshll.u32 %s3455_s10, 4  ;;  %s3504_s13 = int_to_ptr.vmem [resolvable:$true] %s1644_s13 }
  0x6b   : > { %v2342_v5 = vpack.c.bf16 %v425_v4, %v424_v2  ;;  %v427_v7 = vld [vmem:[#allocation5 + $0xa8] sm:$0xff]  ;;  %v3059_v9 = vld [vmem:[%s3048_s12] sm:$0xff]  ;;  %v428_v10 = vld [vmem:[#allocation5 + $0xb0] sm:$0xff]  ;;  %s3502_s11 = scalar_lea.hbm %s3555_s5, %s1809_s28  ;;  %s1630_s22 = scalar_lea.sflag [#allocation4], %s3042_s14 }
  0x6c   : > { %2339 = vmatprep.subr.bf16.mxu0 %v2338_v3  ;;  %v2346_v8 = vpack.c.bf16 %v427_v7, %v426_v6  ;;  %v429_v11 = vld [vmem:[#allocation5 + $0xb8] sm:$0xff]  ;;  %2034 = vmatprep.mubr.f32.mxu0 %v3059_v9  ;;  %v430_v13 = vld [vmem:[#allocation5 + $0xc0] sm:$0xff]  ;;  %v431_v14 = vld [vmem:[#allocation5 + $0xc8] sm:$0xff]  ;;  %s2751_s17 = scalar_lea.vmem %s3504_s13, 2048  ;;  %p3589_p0 = scmp.ne.s32.totalorder %s3573_s23, 0 }
  0x6d   : > { %2341 = vmatpush3.bf16.msra.mxu0 %v2338_v3  ;;  %v2350_v12 = vpack.c.bf16 %v429_v11, %v428_v10  ;;  %v2354_v15 = vpack.c.bf16 %v431_v14, %v430_v13  ;;  %v432_v16 = vld [vmem:[#allocation5 + $0xd0] sm:$0xff]  ;;  %v433_v17 = vld [vmem:[#allocation5 + $0xd8] sm:$0xff]  ;;  %v434_v19 = vld [vmem:[#allocation5 + $0xe0] sm:$0xff]  ;;  %p2752_p11 = scmp.ne.s32.totalorder %s3504_s13, %s2751_s17  ;;  %s2828_s7 = smov [#allocation8]  }
  0x6e   : > { %2343 = vmatprep.subr.bf16.mxu0 %v2342_v5  ;;  %v2358_v18 = vpack.c.bf16 %v433_v17, %v432_v16  ;;  %v435_v20 = vld [vmem:[#allocation5 + $0xe8] sm:$0xff]  ;;  %v436_v22 = vld [vmem:[#allocation5 + $0xf0] sm:$0xff]  ;;  %v1074_v23 = vld [vmem:[#allocation7 + $0x80] sm:$0xff]  ;;  %s2755_s6 = sshll.u32 %s2828_s7, 4  ;;  %s2756_s6 = int_to_ptr.vmem [resolvable:$false] %s2755_s6 }
  0x6f   : > { %v2362_v21 = vpack.c.bf16 %v435_v20, %v434_v19  ;;  %v1075_v24 = vld [vmem:[#allocation7 + $0x88] sm:$0xff]  ;;  %v437_v25 = vld [vmem:[#allocation5 + $0xf8] sm:$0xff]  ;;  %v1076_v27 = vld [vmem:[#allocation7 + $0x90] sm:$0xff]  ;;  %p2753_p2 = pnand %p2752_p11, %p3589_p0  ;;  %s2757_s8 = scalar_lea.vmem %s2756_s6, 4096 }
  0x70   : > { %v2434_v26 = vpack.c.bf16 %v1075_v24, %v1074_v23  ;;  %v1077_v28 = vld [vmem:[#allocation7 + $0x98] sm:$0xff]  ;;  %v1078_v30 = vld [vmem:[#allocation7 + $0xa0] sm:$0xff]  ;;  %v1079_v31 = vld [vmem:[#allocation7 + $0xa8] sm:$0xff]  ;;  %v2366_v32 = vpack.c.bf16 %v437_v25, %v436_v22  ;;  %v308_v25 = vrot.slane %v3059_v9, 7  ;;  %p2758_p7 = scmp.lt.s32.totalorder %s3504_s13, %s2756_s6  ;;  %p2759_p9 = scmp.lt.s32.totalorder %s2757_s8, %s2751_s17 }
  0x71   : > { %2345 = vmatpush3.bf16.msra.mxu0 %v2342_v5  ;;  %v2438_v29 = vpack.c.bf16 %v1077_v28, %v1076_v27  ;;  %v405_v33 = vld [vmem:[#allocation5] sm:$0xff]  ;;  %v406_v34 = vld [vmem:[#allocation5 + $0x8] sm:$0xff]  ;;  %v2442_v35 = vpack.c.bf16 %v1079_v31, %v1078_v30  ;;  %v1080_v36 = vld [vmem:[#allocation7 + $0xb0] sm:$0xff]  ;;  %p2754_p3 = pneg %p2753_p2 }
  0x72   : > { %2347 = vmatprep.subr.bf16.mxu0 %v2346_v8  ;;  %2435 = vmatprep.subr.bf16.mxu1 %v2434_v26  ;;  %v1081_v37 = vld [vmem:[#allocation7 + $0xb8] sm:$0xff]  ;;  %v2370_v38 = vpack.c.bf16 %v406_v34, %v405_v33  ;;  %v407_v39 = vld [vmem:[#allocation5 + $0x10] sm:$0xff]  ;;  %v1082_v42 = vld [vmem:[#allocation7 + $0xc0] sm:$0xff]  ;;  %p2760_p12 = por %p2759_p9, %p2758_p7 }
  0x73   : > { %2437 = vmatpush3.bf16.msra.mxu1 %v2434_v26  ;;  %v408_v40 = vld [vmem:[#allocation5 + $0x18] sm:$0xff]  ;;  %v2446_v41 = vpack.c.bf16 %v1081_v37, %v1080_v36  ;;  %v1083_v43 = vld [vmem:[#allocation7 + $0xc8] sm:$0xff]  ;;  %v3066_v45 = vld [vmem:[%s3048_s12 + $0x10] sm:$0xff] }
  0x74   : > { %2439 = vmatprep.subr.bf16.mxu1 %v2438_v29  ;;  %v3063_v44 = vld [vmem:[%s3048_s12 + $0x8] sm:$0xff]  ;;  %v2374_v46 = vpack.c.bf16 %v408_v40, %v407_v39  ;;  %v409_v47 = vld [vmem:[#allocation5 + $0x20] sm:$0xff]  ;;  %v2450_v49 = vpack.c.bf16 %v1083_v43, %v1082_v42  ;;  %v1084_v50 = vld [vmem:[#allocation7 + $0xd0] sm:$0xff]  ;;  %v311_v31 = vrot.slane %v3066_v45, 7  ;;  %p2761_p1 = pnand %p2760_p12, %p2754_p3 }
  0x75   : > { %2349 = vmatpush3.bf16.msra.mxu0 %v2346_v8  ;;  %v410_v48 = vld [vmem:[#allocation5 + $0x28] sm:$0xff]  ;;  %v1085_v51 = vld [vmem:[#allocation7 + $0xd8] sm:$0xff]  ;;  %v3074_v53 = vld [vmem:[%s3048_s12 + $0x20] sm:$0xff]  ;;  %v309_v23 = vrot.slane %v3063_v44, 7 }
  0x76   : > { %2351 = vmatprep.subr.bf16.mxu0 %v2350_v12  ;;  %v3071_v52 = vld [vmem:[%s3048_s12 + $0x18] sm:$0xff]  ;;  %v2378_v54 = vpack.c.bf16 %v410_v48, %v409_v47  ;;  %v411_v55 = vld [vmem:[#allocation5 + $0x30] sm:$0xff]  ;;  %v2454_v57 = vpack.c.bf16 %v1085_v51, %v1084_v50  ;;  %v1086_v58 = vld [vmem:[#allocation7 + $0xe0] sm:$0xff]  ;;  %v314_v37 = vrot.slane %v3074_v53, 7 }
  0x77   : > { %2441 = vmatpush3.bf16.msra.mxu1 %v2438_v29  ;;  %v412_v56 = vld [vmem:[#allocation5 + $0x38] sm:$0xff]  ;;  %v1087_v59 = vld [vmem:[#allocation7 + $0xe8] sm:$0xff]  ;;  %v3082_v61 = vld [vmem:[%s3048_s12 + $0x30] sm:$0xff]  ;;  %v310_v30 = vsel %vm307_vm0, %v308_v25, %v309_v23 }
  0x78   : > { %2443 = vmatprep.subr.bf16.mxu1 %v2442_v35  ;;  %v3079_v60 = vld [vmem:[%s3048_s12 + $0x28] sm:$0xff]  ;;  %v2382_v62 = vpack.c.bf16 %v412_v56, %v411_v55  ;;  %v413_v63 = vld [vmem:[#allocation5 + $0x40] sm:$0xff]  ;;  %v2458_v1 = vpack.c.bf16 %v1087_v59, %v1086_v58  ;;  %v3087_v2 = vld [vmem:[%s3048_s12 + $0x38] sm:$0xff]  ;;  %v317_v43 = vrot.slane %v3082_v61, 7 }
  0x79   : > { %2353 = vmatpush3.bf16.msra.mxu0 %v2350_v12  ;;  %v414_v0 = vld [vmem:[#allocation5 + $0x48] sm:$0xff]  ;;  %v3090_v3 = vld [vmem:[%s3048_s12 + $0x40] sm:$0xff]  ;;  %v415_v5 = vld [vmem:[#allocation5 + $0x50] sm:$0xff] }
  0x7a   : > { %2355 = vmatprep.subr.bf16.mxu0 %v2354_v15  ;;  %v2386_v4 = vpack.c.bf16 %v414_v0, %v413_v63  ;;  %v416_v6 = vld [vmem:[#allocation5 + $0x58] sm:$0xff]  ;;  %v3095_v7 = vld [vmem:[%s3048_s12 + $0x48] sm:$0xff]  ;;  %v3098_v8 = vld [vmem:[%s3048_s12 + $0x50] sm:$0xff]  ;;  %v320_v51 = vrot.slane %v3090_v3, 7 }
  0x7b   : > { %2445 = vmatpush3.bf16.msra.mxu1 %v2442_v35  ;;  %v2390_v10 = vpack.c.bf16 %v416_v6, %v415_v5  ;;  %v417_v11 = vld [vmem:[#allocation5 + $0x60] sm:$0xff]  ;;  %v418_v12 = vld [vmem:[#allocation5 + $0x68] sm:$0xff]  ;;  %v3103_v13 = vld [vmem:[%s3048_s12 + $0x58] sm:$0xff]  ;;  %v323_v59 = vrot.slane %v3098_v8, 7 }
  0x7c   : > { %2447 = vmatprep.subr.bf16.mxu1 %v2446_v41  ;;  %v3106_v14 = vld [vmem:[%s3048_s12 + $0x60] sm:$0xff]  ;;  %v419_v16 = vld [vmem:[#allocation5 + $0x70] sm:$0xff]  ;;  %v420_v17 = vld [vmem:[#allocation5 + $0x78] sm:$0xff] }
  0x7d   : > { %2357 = vmatpush3.bf16.msra.mxu0 %v2354_v15  ;;  %v2394_v15 = vpack.c.bf16 %v418_v12, %v417_v11  ;;  %v3114_v19 = vld [vmem:[%s3048_s12 + $0x70] sm:$0xff]  ;;  %v2398_v20 = vpack.c.bf16 %v420_v17, %v419_v16  ;;  %v730_v22 = vld [vmem:[#allocation5 + $0x108] sm:$0xff]  ;;  %v3120_v24 = vld [vmem:[%s3048_s12 + $0x78] sm:$0xff]  ;;  %v326_v5 = vrot.slane %v3106_v14, 7 }
  0x7e   : > { %2359 = vmatprep.subr.bf16.mxu0 %v2358_v18  ;;  %vm3124_vm1 = vmneg %vm307_vm0  ;;  %v731_v28 = vld [vmem:[#allocation5 + $0x110] sm:$0xff]  ;;  %v732_v29 = vld [vmem:[#allocation5 + $0x118] sm:$0xff]  ;;  %v329_v16 = vrot.slane %v3114_v19, 7  ;;  %v330_v17 = vrot.slane %v3120_v24, 7 }
  0x7f   : > { %2449 = vmatpush3.bf16.msra.mxu1 %v2446_v41  ;;  %v2406_v33 = vpack.c.bf16 %v732_v29, %v731_v28  ;;  %v733_v34 = vld [vmem:[#allocation5 + $0x120] sm:$0xff]  ;;  %v734_v35 = vld [vmem:[#allocation5 + $0x128] sm:$0xff]  ;;  %v735_v40 = vld [vmem:[#allocation5 + $0x130] sm:$0xff]  ;;  %v361_v28 = vrot.slane %v3071_v52, 1 }
  0x80   : > { %2451 = vmatprep.subr.bf16.mxu1 %v2450_v49  ;;  %v2410_v39 = vpack.c.bf16 %v734_v35, %v733_v34  ;;  %v736_v41 = vld [vmem:[#allocation5 + $0x138] sm:$0xff]  ;;  %v737_v48 = vld [vmem:[#allocation5 + $0x140] sm:$0xff]  ;;  %v739_v56 = vld [vmem:[#allocation5 + $0x150] sm:$0xff]  ;;  %v331_v23 = vsel %vm307_vm0, %v329_v16, %v330_v17  ;;  %v367_v34 = vrot.slane %v3087_v2, 1 }
  0x81   : > { %2361 = vmatpush3.bf16.msra.mxu0 %v2358_v18  ;;  %v3111_v18 = vld [vmem:[%s3048_s12 + $0x68] sm:$0xff]  ;;  %v2414_v47 = vpack.c.bf16 %v736_v41, %v735_v40  ;;  %v741_v0 = vld [vmem:[#allocation5 + $0x160] sm:$0xff]  ;;  %v743_v11 = vld [vmem:[#allocation5 + $0x170] sm:$0xff]  ;;  %v373_v40 = vrot.slane %v3103_v13, 1 }
  0x82   : > { %2363 = vmatprep.subr.bf16.mxu0 %v2362_v21  ;;  %v327_v6 = vrot.slane %v3111_v18, 7  ;;  %v744_v12 = vld [vmem:[#allocation5 + $0x178] sm:$0xff] }
  0x83   : > { %2453 = vmatpush3.bf16.msra.mxu1 %v2450_v49  ;;  %v738_v49 = vld [vmem:[#allocation5 + $0x148] sm:$0xff] }
  0x84   : > { %2455 = vmatprep.subr.bf16.mxu1 %v2454_v57  ;;  %v2418_v55 = vpack.c.bf16 %v738_v49, %v737_v48  ;;  %v379_v48 = vrot.slane %v3120_v24, 1 }
  0x85   : > { %2365 = vmatpush3.bf16.msra.mxu0 %v2362_v21  ;;  %v729_v21 = vld [vmem:[#allocation5 + $0x100] sm:$0xff] }
  0x86   : > { %2367 = vmatprep.subr.bf16.mxu0 %v2366_v32  ;;  %v2402_v27 = vpack.c.bf16 %v730_v22, %v729_v21  ;;  %v357_v21 = vrot.slane %v3059_v9, 1  ;;  %v358_v22 = vrot.slane %v3063_v44, 1 }
  0x87   : > { %2457 = vmatpush3.bf16.msra.mxu1 %v2454_v57  ;;  %v740_v57 = vld [vmem:[#allocation5 + $0x158] sm:$0xff] }
  0x88   : > { %2459 = vmatprep.subr.bf16.mxu1 %v2458_v1  ;;  %v2422_v63 = vpack.c.bf16 %v740_v57, %v739_v56  ;;  %v1058_v56 = vld [vmem:[#allocation7 + $0x8] sm:$0xff] }
  0x89   : > { %2369 = vmatpush3.bf16.msra.mxu0 %v2366_v32  ;;  %v312_v32 = vrot.slane %v3071_v52, 7 }
  0x8a   : > { %2371 = vmatprep.subr.bf16.mxu0 %v2370_v38 }
  0x8b   : > { %2461 = vmatpush3.bf16.msra.mxu1 %v2458_v1  ;;  %v313_v36 = vsel %vm307_vm0, %v311_v31, %v312_v32  ;;  %v742_v1 = vld [vmem:[#allocation5 + $0x168] sm:$0xff] }
  0x8c   : > { %2035 = vmatmul.mubr.f32.vlgmr.msra.gmra.mrb[0].mxu0 %v3063_v44 }
  0x8d   : > { %2373 = vmatpush3.bf16.msra.mxu0 %v2370_v38  ;;  %2037 = vmatprep.mubr.f32.mxu0 %v3066_v45  ;;  %v315_v38 = vrot.slane %v3079_v60, 7 }
  0x8e   : > { %2375 = vmatprep.subr.bf16.mxu0 %v2374_v46 }
  0x8f   : > { %v316_v42 = vsel %vm307_vm0, %v314_v37, %v315_v38 }
  0x90   : > { %2038 = vmatmul.mubr.f32.gmra.mrb[2].mxu0 %v3071_v52 }
  0x91   : > { %2377 = vmatpush3.bf16.msra.mxu0 %v2374_v46  ;;  %2040 = vmatprep.mubr.f32.mxu0 %v3074_v53  ;;  %v318_v46 = vrot.slane %v3087_v2, 7 }
  0x92   : > { %2379 = vmatprep.subr.bf16.mxu0 %v2378_v54 }
  0x93   : > { %v319_v50 = vsel %vm307_vm0, %v317_v43, %v318_v46 }
  0x94   : > { %2041 = vmatmul.mubr.f32.gmra.mrb[4].mxu0 %v3079_v60 }
  0x95   : > { %2381 = vmatpush3.bf16.msra.mxu0 %v2378_v54  ;;  %2043 = vmatprep.mubr.f32.mxu0 %v3082_v61  ;;  %v321_v54 = vrot.slane %v3095_v7, 7 }
  0x96   : > { %2383 = vmatprep.subr.bf16.mxu0 %v2382_v62 }
  0x97   : > { %v322_v58 = vsel %vm307_vm0, %v320_v51, %v321_v54 }
  0x98   : > { %2044 = vmatmul.mubr.f32.gmra.mrb[6].mxu0 %v3087_v2 }
  0x99   : > { %2385 = vmatpush3.bf16.msra.mxu0 %v2382_v62  ;;  %2046 = vmatprep.mubr.f32.mxu0 %v3090_v3  ;;  %v324_v62 = vrot.slane %v3103_v13, 7 }
  0x9a   : > { %2387 = vmatprep.subr.bf16.mxu0 %v2386_v4 }
  0x9c   : > { %2047 = vmatmul.mubr.f32.gmra.mrb[8].mxu0 %v3095_v7 }
  0x9d   : > { %2389 = vmatpush3.bf16.msra.mxu0 %v2386_v4  ;;  %2049 = vmatprep.mubr.f32.mxu0 %v3098_v8  ;;  %v325_v4 = vsel %vm307_vm0, %v323_v59, %v324_v62 }
  0x9e   : > { %2391 = vmatprep.subr.bf16.mxu0 %v2390_v10 }
  0xa0   : > { %2050 = vmatmul.mubr.f32.gmra.mrb[10].mxu0 %v3103_v13 }
  0xa1   : > { %2393 = vmatpush3.bf16.msra.mxu0 %v2390_v10  ;;  %2052 = vmatprep.mubr.f32.mxu0 %v3106_v14  ;;  %v2426_v10 = vpack.c.bf16 %v742_v1, %v741_v0  ;;  %v1059_v1 = vld [vmem:[#allocation7 + $0x10] sm:$0xff] }
  0xa2   : > { %2395 = vmatprep.subr.bf16.mxu0 %v2394_v15 }
  0xa4   : > { %2053 = vmatmul.mubr.f32.gmra.mrb[12].mxu0 %v3111_v18 }
  0xa5   : > { %2397 = vmatpush3.bf16.msra.mxu0 %v2394_v15  ;;  %2055 = vmatprep.mubr.f32.mxu0 %v3114_v19  ;;  %v328_v15 = vsel %vm307_vm0, %v326_v5, %v327_v6 }
  0xa6   : > { %2399 = vmatprep.subr.bf16.mxu0 %v2398_v20 }
  0xa8   : > { %2056 = vmatmul.mubr.f32.gmra.mrb[14].mxu0 %v3120_v24 }
  0xa9   : > { %2401 = vmatpush3.bf16.msra.mxu0 %v2398_v20  ;;  %2090 = vmatprep.mubr.msk.f32.mxu0 %vm3124_vm1, %v308_v25  ;;  %v2430_v20 = vpack.c.bf16 %v744_v12, %v743_v11  ;;  %v359_v25 = vsel %vm356_vm2, %v357_v21, %v358_v22 }
  0xaa   : > { %2403 = vmatprep.subr.bf16.mxu0 %v2402_v27 }
  0xac   : > { %2091 = vmatmul.mubr.f32.vlgmr.msra.gmra.mrb[0].mxu0 %v310_v30  ;;  %v363_v30 = vrot.slane %v3074_v53, 1 }
  0xad   : > { %2405 = vmatpush3.bf16.msra.mxu0 %v2402_v27  ;;  %2093 = vmatprep.mubr.msk.f32.mxu0 %vm3124_vm1, %v311_v31  ;;  %v360_v27 = vrot.slane %v3066_v45, 1  ;;  %v364_v31 = vrot.slane %v3079_v60, 1 }
  0xae   : > { %2407 = vmatprep.subr.bf16.mxu0 %v2406_v33 }
  0xaf   : > { %v362_v29 = vsel %vm356_vm2, %v360_v27, %v361_v28  ;;  %v365_v32 = vsel %vm356_vm2, %v363_v30, %v364_v31 }
  0xb0   : > { %2094 = vmatmul.mubr.f32.gmra.mrb[2].mxu0 %v313_v36  ;;  %v369_v36 = vrot.slane %v3090_v3, 1 }
  0xb1   : > { %2409 = vmatpush3.bf16.msra.mxu0 %v2406_v33  ;;  %2096 = vmatprep.mubr.msk.f32.mxu0 %vm3124_vm1, %v314_v37  ;;  %v366_v33 = vrot.slane %v3082_v61, 1  ;;  %v370_v37 = vrot.slane %v3095_v7, 1 }
  0xb2   : > { %2411 = vmatprep.subr.bf16.mxu0 %v2410_v39 }
  0xb3   : > { %v368_v35 = vsel %vm356_vm2, %v366_v33, %v367_v34  ;;  %v371_v38 = vsel %vm356_vm2, %v369_v36, %v370_v37 }
  0xb4   : > { %2097 = vmatmul.mubr.f32.gmra.mrb[4].mxu0 %v316_v42  ;;  %v375_v42 = vrot.slane %v3106_v14, 1 }
  0xb5   : > { %2413 = vmatpush3.bf16.msra.mxu0 %v2410_v39  ;;  %2099 = vmatprep.mubr.msk.f32.mxu0 %vm3124_vm1, %v317_v43  ;;  %v372_v39 = vrot.slane %v3098_v8, 1  ;;  %v376_v43 = vrot.slane %v3111_v18, 1 }
  0xb6   : > { %2415 = vmatprep.subr.bf16.mxu0 %v2414_v47 }
  0xb7   : > { %v374_v41 = vsel %vm356_vm2, %v372_v39, %v373_v40  ;;  %v377_v46 = vsel %vm356_vm2, %v375_v42, %v376_v43 }
  0xb8   : > { %2100 = vmatmul.mubr.f32.gmra.mrb[6].mxu0 %v319_v50  ;;  %v1088_v50 = vld [vmem:[#allocation7 + $0xf0] sm:$0xff] }
  0xb9   : > { %2417 = vmatpush3.bf16.msra.mxu0 %v2414_v47  ;;  %2102 = vmatprep.mubr.msk.f32.mxu0 %vm3124_vm1, %v320_v51  ;;  %v378_v47 = vrot.slane %v3114_v19, 1  ;;  %v1089_v51 = vld [vmem:[#allocation7 + $0xf8] sm:$0xff] }
  0xba   : > { %2419 = vmatprep.subr.bf16.mxu0 %v2418_v55  ;;  %v2462_v54 = vpack.c.bf16 %v1089_v51, %v1088_v50 }
  0xbb   : > { %v380_v49 = vsel %vm356_vm2, %v378_v47, %v379_v48 }
  0xbc   : > { %2103 = vmatmul.mubr.f32.gmra.mrb[8].mxu0 %v322_v58  ;;  %2463 = vmatprep.subr.bf16.mxu1 %v2462_v54  ;;  %v3202_v58 = vld [vmem:[%s3552_s2] ss:$0 sm:$0xff] }
  0xbd   : > { %2421 = vmatpush3.bf16.msra.mxu0 %v2418_v55  ;;  %2105 = vmatprep.mubr.msk.f32.mxu0 %vm3124_vm1, %v323_v59  ;;  %v1057_v55 = vld [vmem:[#allocation7] sm:$0xff] }
  0xbe   : > { %2423 = vmatprep.subr.bf16.mxu0 %v2422_v63  ;;  %2465 = vmatpush3.bf16.msra.mxu1 %v2462_v54  ;;  %v2466_v57 = vpack.c.bf16 %v1058_v56, %v1057_v55 }
  0xc0   : > { %2106 = vmatmul.mubr.f32.gmra.mrb[10].mxu0 %v325_v4  ;;  %2467 = vmatprep.subr.bf16.mxu1 %v2466_v57  ;;  %v1060_v4 = vld [vmem:[#allocation7 + $0x18] sm:$0xff] }
  0xc1   : > { %2425 = vmatpush3.bf16.msra.mxu0 %v2422_v63  ;;  %2108 = vmatprep.mubr.msk.f32.mxu0 %vm3124_vm1, %v326_v5  ;;  %v2470_v17 = vpack.c.bf16 %v1060_v4, %v1059_v1 }
  0xc2   : > { %2427 = vmatprep.subr.bf16.mxu0 %v2426_v10 }
  0xc4   : > { %2109 = vmatmul.mubr.f32.gmra.mrb[12].mxu0 %v328_v15 }
  0xc5   : > { %2429 = vmatpush3.bf16.msra.mxu0 %v2426_v10  ;;  %2111 = vmatprep.mubr.msk.f32.mxu0 %vm3124_vm1, %v329_v16 }
  0xc6   : > { %2431 = vmatprep.subr.bf16.mxu0 %v2430_v20 }
  0xc8   : > { %2112 = vmatmul.mubr.f32.gmra.mrb[14].mxu0 %v331_v23  ;;  %v1061_v23 = vld [vmem:[#allocation7 + $0x20] sm:$0xff] }
  0xc9   : > { %2433 = vmatpush3.bf16.msra.mxu0 %v2430_v20  ;;  %2146 = vmatprep.mubr.f32.mxu0 %v359_v25  ;;  %v1062_v25 = vld [vmem:[#allocation7 + $0x28] sm:$0xff] }
  0xca   : > { %v2474_v36 = vpack.c.bf16 %v1062_v25, %v1061_v23 }
  0xcc   : > { %2147 = vmatmul.mubr.msk.f32.vlgmr.msra.gmra.mrb[0].mxu0 %vm356_vm2, %v358_v22 }
  0xcd   : > { %2149 = vmatprep.mubr.f32.mxu0 %v362_v29 }
  0xd0   : > { %2150 = vmatmul.mubr.msk.f32.gmra.mrb[2].mxu0 %vm356_vm2, %v361_v28 }
  0xd1   : > { %2152 = vmatprep.mubr.f32.mxu0 %v365_v32 }
  0xd4   : > { %2153 = vmatmul.mubr.msk.f32.gmra.mrb[4].mxu0 %vm356_vm2, %v364_v31 }
  0xd5   : > { %2155 = vmatprep.mubr.f32.mxu0 %v368_v35 }
  0xd8   : > { %2156 = vmatmul.mubr.msk.f32.gmra.mrb[6].mxu0 %vm356_vm2, %v367_v34 }
  0xd9   : > { %2158 = vmatprep.mubr.f32.mxu0 %v371_v38 }
  0xdc   : > { %2159 = vmatmul.mubr.msk.f32.gmra.mrb[8].mxu0 %vm356_vm2, %v370_v37 }
  0xdd   : > { %2161 = vmatprep.mubr.f32.mxu0 %v374_v41  ;;  %v1064_v41 = vld [vmem:[#allocation7 + $0x38] sm:$0xff] }
  0xe0   : > { %2162 = vmatmul.mubr.msk.f32.gmra.mrb[10].mxu0 %vm356_vm2, %v373_v40  ;;  %v1063_v40 = vld [vmem:[#allocation7 + $0x30] sm:$0xff] }
  0xe1   : > { %2164 = vmatprep.mubr.f32.mxu0 %v377_v46  ;;  %v2478_v55 = vpack.c.bf16 %v1064_v41, %v1063_v40 }
  0xe4   : > { %2165 = vmatmul.mubr.msk.f32.gmra.mrb[12].mxu0 %vm356_vm2, %v376_v43 }
  0xe5   : > { %2167 = vmatprep.mubr.f32.mxu0 %v380_v49 }
  0xe8   : > { %2168 = vmatmul.mubr.msk.f32.gmra.mrb[14].mxu0 %vm356_vm2, %v379_v48 }
 0x19f   : > { %v2148_v59 = vpop.f32.mrb[0].mxu0 }
 0x1a0   : > { %v914_v62 = vadd.f32 %v2148_v59, %v3202_v58  ;;  %v811_v63 = vpop.f32.mrb[1].mxu0 }
 0x1a1   : > { %v913_v0 = vadd.f32 %v3202_v58, %v811_v63  ;;  %v1066_v63 = vld [vmem:[#allocation7 + $0x48] sm:$0xff] }
 0x1a2   : > { %v3206_v5 = vmax.f32 %v914_v62, 0.0  ;;  %v1065_v62 = vld [vmem:[#allocation7 + $0x40] sm:$0xff] }
 0x1a3   : > { %v3208_v6 = vmax.f32 %v913_v0, 0.0  ;;  %v2151_v10 = vpop.f32.mrb[2].mxu0 }
 0x1a4   : > { %v962_v11 = vrot.slane %v3206_v5, 7  ;;  %v3563_v12 = vrot.slane %v3206_v5, 1  ;;  %v916_v15 = vadd.f32 %v2151_v10, %v3202_v58  ;;  %v821_v16 = vpop.f32.mrb[3].mxu0 }
 0x1a5   : > { %v961_v20 = vrot.slane %v3208_v6, 7  ;;  %v1009_v21 = vrot.slane %v3208_v6, 1  ;;  %v915_v22 = vadd.f32 %v3202_v58, %v821_v16  ;;  %2202 = vmatprep.mubr.f32.mxu1 %v3208_v6 }
 0x1a6   : > { %v3217_v27 = vmax.f32 %v916_v15, 0.0  ;;  %2203 = vmatmul.mubr.f32.vlgmr.msra.gmra.mrb[0].mxu1 %v3206_v5 }
 0x1a7   : > { %v3220_v28 = vmax.f32 %v915_v22, 0.0  ;;  %v2154_v29 = vpop.f32.mrb[4].mxu0  ;;  %2469 = vmatpush3.bf16.msra.mxu1 %v2466_v57  ;;  %v3225_v30 = vsel %vm307_vm0, %v961_v20, %v962_v11  ;;  %v3230_v31 = vsel %vm356_vm2, %v1009_v21, %v3563_v12  ;;  %v2482_v22 = vpack.c.bf16 %v1066_v63, %v1065_v62  ;;  %v1069_v62 = vld [vmem:[#allocation7 + $0x60] sm:$0xff]  ;;  %v1070_v63 = vld [vmem:[#allocation7 + $0x68] sm:$0xff] }
 0x1a8   : > { %v965_v32 = vrot.slane %v3217_v27, 7  ;;  %v3562_v33 = vrot.slane %v3217_v27, 1  ;;  %v918_v34 = vadd.f32 %v2154_v29, %v3202_v58  ;;  %v831_v35 = vpop.f32.mrb[5].mxu0  ;;  %2471 = vmatprep.subr.bf16.mxu1 %v2470_v17 }
 0x1a9   : > { %v964_v37 = vrot.slane %v3220_v28, 7  ;;  %v1012_v38 = vrot.slane %v3220_v28, 1  ;;  %v917_v39 = vadd.f32 %v3202_v58, %v831_v35  ;;  %2205 = vmatprep.mubr.f32.mxu1 %v3220_v28  ;;  %v1390_v28 = vld [vmem:[#allocation7 + $0x148] sm:$0xff] }
 0x1aa   : > { %v3239_v42 = vmax.f32 %v918_v34, 0.0  ;;  %2206 = vmatmul.mubr.f32.gmra.mrb[2].mxu1 %v3217_v27  ;;  %v1068_v34 = vld [vmem:[#allocation7 + $0x58] sm:$0xff] }
 0x1ab   : > { %v3242_v43 = vmax.f32 %v917_v39, 0.0  ;;  %v2157_v46 = vpop.f32.mrb[6].mxu0  ;;  %2473 = vmatpush3.bf16.msra.mxu1 %v2470_v17  ;;  %v3247_v47 = vsel %vm307_vm0, %v964_v37, %v965_v32  ;;  %v3252_v48 = vsel %vm356_vm2, %v1012_v38, %v3562_v33  ;;  %v1067_v32 = vld [vmem:[#allocation7 + $0x50] sm:$0xff] }
 0x1ac   : > { %v968_v49 = vrot.slane %v3239_v42, 7  ;;  %v3561_v50 = vrot.slane %v3239_v42, 1  ;;  %v920_v51 = vadd.f32 %v2157_v46, %v3202_v58  ;;  %v841_v54 = vpop.f32.mrb[7].mxu0  ;;  %2475 = vmatprep.subr.bf16.mxu1 %v2474_v36  ;;  %v3585_v26 = vrot.slane %v3239_v42, 1 }
 0x1ad   : > { %v967_v56 = vrot.slane %v3242_v43, 7  ;;  %v1015_v57 = vrot.slane %v3242_v43, 1  ;;  %v919_v59 = vadd.f32 %v3202_v58, %v841_v54  ;;  %2208 = vmatprep.mubr.f32.mxu1 %v3242_v43  ;;  %v2486_v54 = vpack.c.bf16 %v1068_v34, %v1067_v32  ;;  %v1392_v43 = vld [vmem:[#allocation7 + $0x158] sm:$0xff] }
 0x1ae   : > { %v3261_v0 = vmax.f32 %v920_v51, 0.0  ;;  %2209 = vmatmul.mubr.f32.gmra.mrb[4].mxu1 %v3239_v42  ;;  %v3445_v42 = vld [vmem:[%s3554_s4] ss:$0 sm:$0xff] }
 0x1af   : > { %v3264_v1 = vmax.f32 %v919_v59, 0.0  ;;  %v2160_v4 = vpop.f32.mrb[8].mxu0  ;;  %2477 = vmatpush3.bf16.msra.mxu1 %v2474_v36  ;;  %v3269_v10 = vsel %vm307_vm0, %v967_v56, %v968_v49  ;;  %v3274_v11 = vsel %vm356_vm2, %v1015_v57, %v3561_v50 }
 0x1b0   : > { %v971_v15 = vrot.slane %v3261_v0, 7  ;;  %v3560_v16 = vrot.slane %v3261_v0, 1  ;;  %v922_v17 = vadd.f32 %v2160_v4, %v3202_v58  ;;  %v851_v21 = vpop.f32.mrb[9].mxu0  ;;  %2479 = vmatprep.subr.bf16.mxu1 %v2478_v55 }
 0x1b1   : > { %v3567_v23 = vrot.slane %v3264_v1, 7  ;;  %v1018_v25 = vrot.slane %v3264_v1, 1  ;;  %v921_v29 = vadd.f32 %v3202_v58, %v851_v21  ;;  %2211 = vmatprep.mubr.f32.mxu1 %v3264_v1 }
 0x1b2   : > { %v3283_v35 = vmax.f32 %v922_v17, 0.0  ;;  %2212 = vmatmul.mubr.f32.gmra.mrb[6].mxu1 %v3261_v0 }
 0x1b3   : > { %v3286_v36 = vmax.f32 %v921_v29, 0.0  ;;  %v2163_v38 = vpop.f32.mrb[10].mxu0  ;;  %2481 = vmatpush3.bf16.msra.mxu1 %v2478_v55  ;;  %v3291_v39 = vsel %vm307_vm0, %v3567_v23, %v971_v15  ;;  %v3296_v40 = vsel %vm356_vm2, %v1018_v25, %v3560_v16  ;;  %v1384_v23 = vld [vmem:[#allocation7 + $0x118] sm:$0xff] }
 0x1b4   : > { %v974_v41 = vrot.slane %v3283_v35, 7  ;;  %v3559_v46 = vrot.slane %v3283_v35, 1  ;;  %v924_v49 = vadd.f32 %v2163_v38, %v3202_v58  ;;  %v861_v51 = vpop.f32.mrb[11].mxu0  ;;  %2483 = vmatprep.subr.bf16.mxu1 %v2482_v22 }
 0x1b5   : > { %v3566_v55 = vrot.slane %v3286_v36, 7  ;;  %v1021_v57 = vrot.slane %v3286_v36, 1  ;;  %v923_v59 = vadd.f32 %v3202_v58, %v861_v51  ;;  %2214 = vmatprep.mubr.f32.mxu1 %v3286_v36 }
 0x1b6   : > { %v3305_v4 = vmax.f32 %v924_v49, 0.0  ;;  %2215 = vmatmul.mubr.f32.gmra.mrb[8].mxu1 %v3283_v35  ;;  %v2490_v49 = vpack.c.bf16 %v1070_v63, %v1069_v62 }
 0x1b7   : > { %v3308_v15 = vmax.f32 %v923_v59, 0.0  ;;  %v2166_v17 = vpop.f32.mrb[12].mxu0  ;;  %2485 = vmatpush3.bf16.msra.mxu1 %v2482_v22  ;;  %v3313_v21 = vsel %vm307_vm0, %v3566_v55, %v974_v41  ;;  %v3318_v25 = vsel %vm356_vm2, %v1021_v57, %v3559_v46  ;;  %v1071_v59 = vld [vmem:[#allocation7 + $0x70] sm:$0xff]  ;;  %v1072_v57 = vld [vmem:[#allocation7 + $0x78] sm:$0xff] }
 0x1b8   : > { %v977_v29 = vrot.slane %v3305_v4, 7  ;;  %v3565_v32 = vrot.slane %v3305_v4, 1  ;;  %v926_v34 = vadd.f32 %v2166_v17, %v3202_v58  ;;  %v871_v38 = vpop.f32.mrb[13].mxu0  ;;  %2487 = vmatprep.subr.bf16.mxu1 %v2486_v54  ;;  %v2494_v33 = vpack.c.bf16 %v1072_v57, %v1071_v59 }
 0x1b9   : > { %v3564_v22 = vrot.slane %v3308_v15, 7  ;;  %v1024_v51 = vrot.slane %v3308_v15, 1  ;;  %v925_v41 = vadd.f32 %v3202_v58, %v871_v38  ;;  %2217 = vmatprep.mubr.f32.mxu1 %v3308_v15 }
 0x1ba   : > { %v3327_v46 = vmax.f32 %v926_v34, 0.0  ;;  %2218 = vmatmul.mubr.f32.gmra.mrb[10].mxu1 %v3305_v4 }
 0x1bb   : > { %v3330_v16 = vmax.f32 %v925_v41, 0.0  ;;  %v2169_v17 = vpop.f32.mrb[14].mxu0  ;;  %2489 = vmatpush3.bf16.msra.mxu1 %v2486_v54  ;;  %v3335_v62 = vsel %vm307_vm0, %v3564_v22, %v977_v29  ;;  %v3340_v63 = vsel %vm356_vm2, %v1024_v51, %v3565_v32  ;;  %v1381_v22 = vld [vmem:[#allocation7 + $0x100] sm:$0xff]  ;;  %v1382_v51 = vld [vmem:[#allocation7 + $0x108] sm:$0xff] }
 0x1bc   : > { %v980_v38 = vrot.slane %v3327_v46, 7  ;;  %v1028_v34 = vrot.slane %v3327_v46, 1  ;;  %v928_v50 = vadd.f32 %v2169_v17, %v3202_v58  ;;  %v881_v41 = vpop.f32.mrb[15].mxu0  ;;  %2491 = vmatprep.subr.bf16.mxu1 %v2490_v49 }
 0x1bd   : > { %v979_v54 = vrot.slane %v3330_v16, 7  ;;  %v1027_v12 = vrot.slane %v3330_v16, 1  ;;  %v927_v29 = vadd.f32 %v3202_v58, %v881_v41  ;;  %2220 = vmatprep.mubr.f32.mxu1 %v3330_v16  ;;  %v3584_v16 = vrot.slane %v3217_v27, 1 }
 0x1be   : > { %v3349_v32 = vmax.f32 %v928_v50, 0.0  ;;  %2221 = vmatmul.mubr.f32.gmra.mrb[12].mxu1 %v3327_v46  ;;  %v2498_v50 = vpack.c.bf16 %v1382_v51, %v1381_v22  ;;  %v1386_v51 = vld [vmem:[#allocation7 + $0x128] sm:$0xff]  ;;  %v3588_v27 = vrot.slane %v3305_v4, 1 }
 0x1bf   : > { %v3352_v55 = vmax.f32 %v927_v29, 0.0  ;;  %2493 = vmatpush3.bf16.msra.mxu1 %v2490_v49  ;;  %v981_v59 = vsel %vm307_vm0, %v979_v54, %v980_v38  ;;  %v3360_v57 = vsel %vm356_vm2, %v1027_v12, %v1028_v34  ;;  %v1383_v49 = vld [vmem:[#allocation7 + $0x110] sm:$0xff] }
 0x1c0   : > { %v983_v58 = vrot.slane %v3349_v32, 7  ;;  %v1031_v17 = vrot.slane %v3349_v32, 1  ;;  %2495 = vmatprep.subr.bf16.mxu1 %v2494_v33  ;;  %v2502_v38 = vpack.c.bf16 %v1384_v23, %v1383_v49  ;;  %v1389_v23 = vld [vmem:[#allocation7 + $0x140] sm:$0xff]  ;;  %v1395_v49 = vld [vmem:[#allocation7 + $0x170] sm:$0xff] }
 0x1c1   : > { %v982_v41 = vrot.slane %v3352_v55, 7  ;;  %v1030_v29 = vrot.slane %v3352_v55, 1  ;;  %2223 = vmatprep.mubr.f32.mxu1 %v3352_v55  ;;  %v1385_v55 = vld [vmem:[#allocation7 + $0x120] sm:$0xff] }
 0x1c2   : > { %2224 = vmatmul.mubr.f32.gmra.mrb[14].mxu1 %v3349_v32  ;;  %v2506_v6 = vpack.c.bf16 %v1386_v51, %v1385_v55 }
 0x1c3   : > { %2497 = vmatpush3.bf16.msra.mxu1 %v2494_v33  ;;  %2258 = vmatprep.mubr.msk.f32.mxu1 %vm3124_vm1, %v961_v20  ;;  %v984_v12 = vsel %vm307_vm0, %v982_v41, %v983_v58  ;;  %v3376_v22 = vsel %vm356_vm2, %v1030_v29, %v1031_v17  ;;  %v1387_v20 = vld [vmem:[#allocation7 + $0x130] sm:$0xff]  ;;  %v1388_v33 = vld [vmem:[#allocation7 + $0x138] sm:$0xff]  ;;  %v3582_v29 = vrot.slane %v3308_v15, 7  ;;  %v3583_v15 = vrot.slane %v3206_v5, 1 }
 0x1c4   : > { %2499 = vmatprep.subr.bf16.mxu1 %v2498_v50  ;;  %v1391_v58 = vld [vmem:[#allocation7 + $0x150] sm:$0xff]  ;;  %v3587_v5 = vrot.slane %v3283_v35, 1 }
 0x1c6   : > { %2259 = vmatmul.mubr.f32.vlgmr.msra.gmra.mrb[0].mxu1 %v3225_v30  ;;  %v2510_v30 = vpack.c.bf16 %v1388_v33, %v1387_v20 }
 0x1c7   : > { %2261 = vmatprep.mubr.msk.f32.mxu1 %vm3124_vm1, %v964_v37  ;;  %2501 = vmatpush3.bf16.msra.mxu1 %v2498_v50  ;;  %v3580_v37 = vrot.slane %v3264_v1, 7  ;;  %v1393_v50 = vld [vmem:[#allocation7 + $0x160] sm:$0xff]  ;;  %v1394_v1 = vld [vmem:[#allocation7 + $0x168] sm:$0xff] }
 0x1c8   : > { %2503 = vmatprep.subr.bf16.mxu1 %v2502_v38 }
 0x1ca   : > { %2262 = vmatmul.mubr.f32.gmra.mrb[2].mxu1 %v3247_v47  ;;  %v2514_v47 = vpack.c.bf16 %v1390_v28, %v1389_v23 }
 0x1cb   : > { %2264 = vmatprep.mubr.msk.f32.mxu1 %vm3124_vm1, %v967_v56  ;;  %2505 = vmatpush3.bf16.msra.mxu1 %v2502_v38  ;;  %v3581_v56 = vrot.slane %v3286_v36, 7  ;;  %v1396_v36 = vld [vmem:[#allocation7 + $0x178] sm:$0xff] }
 0x1cc   : > { %2507 = vmatprep.subr.bf16.mxu1 %v2506_v6 }
 0x1ce   : > { %2265 = vmatmul.mubr.f32.gmra.mrb[4].mxu1 %v3269_v10  ;;  %v2518_v10 = vpack.c.bf16 %v1392_v43, %v1391_v58 }
 0x1cf   : > { %2267 = vmatprep.mubr.msk.f32.mxu1 %vm3124_vm1, %v3580_v37  ;;  %2509 = vmatpush3.bf16.msra.mxu1 %v2506_v6 }
 0x1d0   : > { %2511 = vmatprep.subr.bf16.mxu1 %v2510_v30 }
 0x1d2   : > { %2268 = vmatmul.mubr.f32.gmra.mrb[6].mxu1 %v3291_v39  ;;  %v2522_v39 = vpack.c.bf16 %v1394_v1, %v1393_v50 }
 0x1d3   : > { %2270 = vmatprep.mubr.msk.f32.mxu1 %vm3124_vm1, %v3581_v56  ;;  %2513 = vmatpush3.bf16.msra.mxu1 %v2510_v30 }
 0x1d4   : > { %2515 = vmatprep.subr.bf16.mxu1 %v2514_v47 }
 0x1d6   : > { %2271 = vmatmul.mubr.f32.gmra.mrb[8].mxu1 %v3313_v21  ;;  %v2526_v21 = vpack.c.bf16 %v1396_v36, %v1395_v49 }
 0x1d7   : > { %2273 = vmatprep.mubr.msk.f32.mxu1 %vm3124_vm1, %v3582_v29  ;;  %2517 = vmatpush3.bf16.msra.mxu1 %v2514_v47 }
 0x1d8   : > { %2519 = vmatprep.subr.bf16.mxu1 %v2518_v10 }
 0x1da   : > { %2274 = vmatmul.mubr.f32.gmra.mrb[10].mxu1 %v3335_v62 }
 0x1db   : > { %2276 = vmatprep.mubr.msk.f32.mxu1 %vm3124_vm1, %v979_v54  ;;  %2521 = vmatpush3.bf16.msra.mxu1 %v2518_v10 }
 0x1dc   : > { %2523 = vmatprep.subr.bf16.mxu1 %v2522_v39 }
 0x1de   : > { %2277 = vmatmul.mubr.f32.gmra.mrb[12].mxu1 %v981_v59 }
 0x1df   : > { %2279 = vmatprep.mubr.msk.f32.mxu1 %vm3124_vm1, %v982_v41  ;;  %2525 = vmatpush3.bf16.msra.mxu1 %v2522_v39 }
 0x1e0   : > { %2527 = vmatprep.subr.bf16.mxu1 %v2526_v21 }
 0x1e2   : > { %2280 = vmatmul.mubr.f32.gmra.mrb[14].mxu1 %v984_v12 }
 0x1e3   : > { %2529 = vmatpush3.bf16.msra.mxu1 %v2526_v21  ;;  %2314 = vmatprep.mubr.f32.mxu1 %v3230_v31  ;;  %v3586_v31 = vrot.slane %v3261_v0, 1 }
 0x1e6   : > { %2315 = vmatmul.mubr.msk.f32.vlgmr.msra.gmra.mrb[0].mxu1 %vm356_vm2, %v3583_v15 }
 0x1e7   : > { %2317 = vmatprep.mubr.f32.mxu1 %v3252_v48 }
 0x1ea   : > { %2318 = vmatmul.mubr.msk.f32.gmra.mrb[2].mxu1 %vm356_vm2, %v3584_v16 }
 0x1eb   : > { %2320 = vmatprep.mubr.f32.mxu1 %v3274_v11 }
 0x1ee   : > { %2321 = vmatmul.mubr.msk.f32.gmra.mrb[4].mxu1 %vm356_vm2, %v3585_v26 }
 0x1ef   : > { %2323 = vmatprep.mubr.f32.mxu1 %v3296_v40 }
 0x1f2   : > { %2324 = vmatmul.mubr.msk.f32.gmra.mrb[6].mxu1 %vm356_vm2, %v3586_v31 }
 0x1f3   : > { %2326 = vmatprep.mubr.f32.mxu1 %v3318_v25 }
 0x1f6   : > { %2327 = vmatmul.mubr.msk.f32.gmra.mrb[8].mxu1 %vm356_vm2, %v3587_v5 }
 0x1f7   : > { %2329 = vmatprep.mubr.f32.mxu1 %v3340_v63 }
 0x1fa   : > { %2330 = vmatmul.mubr.msk.f32.gmra.mrb[10].mxu1 %vm356_vm2, %v3588_v27 }
 0x1fb   : > { %2332 = vmatprep.mubr.f32.mxu1 %v3360_v57 }
 0x1fe   : > { %2333 = vmatmul.mubr.msk.f32.gmra.mrb[12].mxu1 %vm356_vm2, %v1028_v34 }
 0x1ff   : > { %2335 = vmatprep.mubr.f32.mxu1 %v3376_v22 }
 0x202   : > { %2336 = vmatmul.mubr.msk.f32.gmra.mrb[14].mxu1 %vm356_vm2, %v1031_v17 }
 0x2b9   : > { %v2316_v48 = vpop.f32.mrb[0].mxu1 }
 0x2ba   : > { %v1566_v0 = vadd.f32 %v2316_v48, %v3445_v42  ;;  %v1463_v11 = vpop.f32.mrb[1].mxu1 }
 0x2bb   : > { %v1565_v35 = vadd.f32 %v3445_v42, %v1463_v11 }
 0x2bc   : > { %v1582_v40 = vadd.f32 %v1566_v0, %v3063_v44 }
 0x2bd   : > { %v1581_v46 = vadd.f32 %v1565_v35, %v3059_v9  ;;  %v2319_v4 = vpop.f32.mrb[2].mxu1 }
 0x2be   : > { %v1598_v25 = vmax.f32 %v1582_v40, 0.0  ;;  %v1568_v32 = vadd.f32 %v2319_v4, %v3445_v42  ;;  %v1473_v62 = vpop.f32.mrb[3].mxu1 }
 0x2bf   : > { %v1597_v63 = vmax.f32 %v1581_v46, 0.0  ;;  %v1567_v34 = vadd.f32 %v3445_v42, %v1473_v62 }
 0x2c0   : > { %1614 = vst [vmem:[%s3455_s10 + $0x8] sm:$0xff] %v1598_v25  ;;  %v1584_v44 = vadd.f32 %v1568_v32, %v3071_v52 }
 0x2c1   : > { %1613 = vst [vmem:[%s3455_s10] sm:$0xff] %v1597_v63  ;;  %v1583_v9 = vadd.f32 %v1567_v34, %v3066_v45  ;;  %v2322_v54 = vpop.f32.mrb[4].mxu1 }
 0x2c2   : > { %v1600_v59 = vmax.f32 %v1584_v44, 0.0  ;;  %v1570_v57 = vadd.f32 %v2322_v54, %v3445_v42  ;;  %v1483_v17 = vpop.f32.mrb[5].mxu1 }
 0x2c3   : > { %v1599_v41 = vmax.f32 %v1583_v9, 0.0  ;;  %v1569_v12 = vadd.f32 %v3445_v42, %v1483_v17 }
 0x2c4   : > { %1616 = vst [vmem:[%s3455_s10 + $0x18] sm:$0xff] %v1600_v59  ;;  %v1586_v22 = vadd.f32 %v1570_v57, %v3079_v60 }
 0x2c5   : > { %1615 = vst [vmem:[%s3455_s10 + $0x10] sm:$0xff] %v1599_v41  ;;  %v1585_v38 = vadd.f32 %v1569_v12, %v3074_v53  ;;  %v2325_v52 = vpop.f32.mrb[6].mxu1 }
 0x2c6   : > { %v1602_v55 = vmax.f32 %v1586_v22, 0.0  ;;  %v1572_v45 = vadd.f32 %v2325_v52, %v3445_v42  ;;  %v1493_v51 = vpop.f32.mrb[7].mxu1 }
 0x2c7   : > { %v1601_v6 = vmax.f32 %v1585_v38, 0.0  ;;  %v1571_v20 = vadd.f32 %v3445_v42, %v1493_v51 }
 0x2c8   : > { %1618 = vst [vmem:[%s3455_s10 + $0x28] sm:$0xff] %v1602_v55  ;;  %v1588_v33 = vadd.f32 %v1572_v45, %v3087_v2 }
 0x2c9   : > { %1617 = vst [vmem:[%s3455_s10 + $0x20] sm:$0xff] %v1601_v6  ;;  %v1587_v30 = vadd.f32 %v1571_v20, %v3082_v61  ;;  %v2328_v60 = vpop.f32.mrb[8].mxu1 }
 0x2ca   : > { %v1604_v23 = vmax.f32 %v1588_v33, 0.0  ;;  %v1574_v53 = vadd.f32 %v2328_v60, %v3445_v42  ;;  %v1503_v28 = vpop.f32.mrb[9].mxu1 }
 0x2cb   : > { %v1603_v37 = vmax.f32 %v1587_v30, 0.0  ;;  %v1573_v47 = vadd.f32 %v3445_v42, %v1503_v28 }
 0x2cc   : > { %1620 = vst [vmem:[%s3455_s10 + $0x38] sm:$0xff] %v1604_v23  ;;  %v1590_v58 = vadd.f32 %v1574_v53, %v3095_v7 }
 0x2cd   : > { %1619 = vst [vmem:[%s3455_s10 + $0x30] sm:$0xff] %v1603_v37  ;;  %v1589_v43 = vadd.f32 %v1573_v47, %v3090_v3  ;;  %v2331_v2 = vpop.f32.mrb[10].mxu1 }
 0x2ce   : > { %v1606_v56 = vmax.f32 %v1590_v58, 0.0  ;;  %v1576_v61 = vadd.f32 %v2331_v2, %v3445_v42  ;;  %v1513_v10 = vpop.f32.mrb[11].mxu1 }
 0x2cf   : > { %v1605_v50 = vmax.f32 %v1589_v43, 0.0  ;;  %v1575_v1 = vadd.f32 %v3445_v42, %v1513_v10 }
 0x2d0   : > { %1622 = vst [vmem:[%s3455_s10 + $0x48] sm:$0xff] %v1606_v56  ;;  %v1592_v29 = vadd.f32 %v1576_v61, %v3103_v13 }
 0x2d1   : > { %1621 = vst [vmem:[%s3455_s10 + $0x40] sm:$0xff] %v1605_v50  ;;  %v1591_v39 = vadd.f32 %v1575_v1, %v3098_v8  ;;  %v2334_v7 = vpop.f32.mrb[12].mxu1 }
 0x2d2   : > { %v1608_v49 = vmax.f32 %v1592_v29, 0.0  ;;  %v1578_v3 = vadd.f32 %v2334_v7, %v3445_v42  ;;  %v1523_v36 = vpop.f32.mrb[13].mxu1 }
 0x2d3   : > { %v1607_v21 = vmax.f32 %v1591_v39, 0.0  ;;  %v1577_v15 = vadd.f32 %v3445_v42, %v1523_v36 }
 0x2d4   : > { %1624 = vst [vmem:[%s3455_s10 + $0x58] sm:$0xff] %v1608_v49  ;;  %v1594_v16 = vadd.f32 %v1578_v3, %v3111_v18 }
 0x2d5   : > { %1623 = vst [vmem:[%s3455_s10 + $0x50] sm:$0xff] %v1607_v21  ;;  %v1593_v13 = vadd.f32 %v1577_v15, %v3106_v14  ;;  %v2337_v26 = vpop.f32.mrb[14].mxu1 }
 0x2d6   : > { %v1610_v8 = vmax.f32 %v1594_v16, 0.0  ;;  %v1580_v31 = vadd.f32 %v2337_v26, %v3445_v42  ;;  %v1533_v5 = vpop.f32.mrb[15].mxu1 }
 0x2d7   : > { %v1609_v27 = vmax.f32 %v1593_v13, 0.0  ;;  %v1579_v48 = vadd.f32 %v3445_v42, %v1533_v5 }
 0x2d8   : > { %1626 = vst [vmem:[%s3455_s10 + $0x68] sm:$0xff] %v1610_v8  ;;  %v1596_v18 = vadd.f32 %v1580_v31, %v3120_v24 }
 0x2d9   : > { %1625 = vst [vmem:[%s3455_s10 + $0x60] sm:$0xff] %v1609_v27  ;;  %v1595_v14 = vadd.f32 %v1579_v48, %v3114_v19 }
 0x2da   : > { %v1612_v0 = vmax.f32 %v1596_v18, 0.0 }
 0x2db   : > { %v1611_v42 = vmax.f32 %v1595_v14, 0.0 }
 0x2dc   : > { %1628 = vst [vmem:[%s3455_s10 + $0x78] sm:$0xff] %v1612_v0 }
 0x2dd   : > { %1627 = vst [vmem:[%s3455_s10 + $0x70] sm:$0xff] %v1611_v42 }
 0x2de   : > { %2764 = shalt.err (!%p2761_p1)
}
 0x2df   : > { %s2765_s12 = scalar_lea.hbm %s3502_s11, 2048  ;;  %s2769_s15 = scalar_lea.hbm %s3555_s5, 4096 }
 0x2e0   : > { %p2766_p13 = scmp.ne.s32.totalorder %s3502_s11, %s2765_s12  ;;  %p2770_p4 = scmp.lt.u32.totalorder %s3502_s11, %s3555_s5 }
 0x2e1   : > { %p2771_p5 = scmp.lt.u32.totalorder %s2769_s15, %s2765_s12  ;;  %p2773_p11 = scmp.lt.u32.totalorder %s2765_s12, %s3502_s11 }
 0x2e2   : > { %p2767_p6 = pnand %p2766_p13, %p3589_p0 }
 0x2e3   : > { %p2772_p8 = por %p2771_p5, %p2770_p4 }
 0x2e4   : > { %p2768_p10 = pneg %p2767_p6 }
 0x2e5   : > { %p2774_p2 = por %p2773_p11, %p2772_p8 }
 0x2e7   : > { %p2775_p3 = pnand %p2774_p2, %p2768_p10 }
 0x2e9   : > { %2778 = shalt.err (!%p2775_p3)
}
 0x2ea   : > { %s2829_s28 = smov 128   ;;  %s2830_s9 = smov 8  }
 0x2eb   : > { %2604 = dma.vmem_to_hbm [thread:$0]  (%p3589_p0), %s3504_s13, 2048, %s3502_s11, %s1630_s22, %s2829_s28, %s2829_s28, %s2830_s9  }
 0x2ec PF: > { %s1659_s30 = sand.u32 1, %s2809_s18   ;;  %p3590_p7 = scmp.ne.s32.totalorder %s3569_s25, 0 }
 0x2ed   : > { %p3591_p9 = scmp.ge.s32.totalorder %s2821_s21, 2  ;;  %s1660_s17 = scalar_lea.sflag [#allocation4], %s1659_s30 }
 0x2ef   : > { %p2618_p12 = pnand %p3591_p9, %p3590_p7 }
 0x2f1   : > { %2804 = dma.done.wait (!%p2618_p12), %s1660_s17, 2048  }
 0x2f2   : > { %2806 = vsyncadd (!%p2618_p12), %s1660_s17, 4294965248  ;;  %p19_p1 = scmp.ge.s32.totalorder %s2977_s29, 4   ;;  %s3592_s18 = smov %s2813_s19 }
 0x2f3   : > { %s3593_s19 = smov %s2817_s20  ;;  %s3594_s20 = smov %s2993_s27 }
 0x2f4   : > { %s3595_s21 = smov %s2977_s29  ;;  %21 = sbr.rel (!%p19_p1) target bundleno = 6 (0x6), region = 97 }
 0x2fb   :  { %1665 = vsyncpa [#allocation3], 1 }
 0x2fc   :  { %1667 = vsyncpa [#allocation3 + $0x1], 1 }
 0x2fd   :  { %1668 = vsyncpa [#allocation6], 1 }
 0x2fe   :  { %1669 = vsyncpa [#allocation4], 1 }
 0x2ff   :  { %1671 = vsyncpa [#allocation4 + $0x1], 1 }

</bundles_post_ra>
